<compile_context>
chip_gen: v7x
topology: tpu7x:2x2x1
jax: 0.10.0
libtpu: 0.0.40
codegen_flags: <defaults>
</compile_context>

<pallas_src>
import functools

import jax
import jax.numpy as jnp
from jax.experimental import pallas as pl
from jax.experimental.pallas import tpu as pltpu

KW = 4        # conv kernel size (fixed by the module)
PADW = 1      # conv padding (fixed by the module)
BN_EPS = 1e-5


def _round_up(x, m):
    return (x + m - 1) // m * m


# ---------------------------------------------------------------------------
# Pallas kernel: fused conv-GEMM + bias + BatchNorm(batch stats) + LeakyReLU.
# ---------------------------------------------------------------------------
def _layer_kernel(*refs, has_bias, do_norm, do_act, inv_m):
    i = 0
    p_ref = refs[i]; i += 1           # (tm, K)  bf16 im2col patches
    w_ref = refs[i]; i += 1           # (K, OC)  bf16 weights
    b_ref = None
    if has_bias:
        b_ref = refs[i]; i += 1       # (1, OC)  f32
    g_ref = bt_ref = None
    if do_norm:
        g_ref = refs[i]; i += 1       # (1, OC)  f32 gamma
        bt_ref = refs[i]; i += 1      # (1, OC)  f32 beta
    o_ref = refs[i]                   # (tm, OC) bf16 output

    # bf16 x bf16 -> f32 accumulation on the MXU (single pass).
    y = jnp.dot(p_ref[...], w_ref[...], preferred_element_type=jnp.float32)
    if has_bias:
        y = y + b_ref[...]
    if do_norm:
        # BatchNorm batch statistics over ALL rows (BN layers run as a single
        # whole-array grid step, so every row is resident in VMEM).  Stats are
        # taken from the f32 accumulator before the bf16 store; centered
        # variance avoids the E[x^2] - mean^2 cancellation issue.
        mean = jnp.sum(y, axis=0, keepdims=True) * inv_m
        yc = y - mean
        var = jnp.sum(yc * yc, axis=0, keepdims=True) * inv_m
        y = yc * (g_ref[...] * jax.lax.rsqrt(var + BN_EPS)) + bt_ref[...]
    if do_act:
        y = jnp.where(y > 0, y, 0.2 * y)      # LeakyReLU(0.2)
    o_ref[...] = y.astype(o_ref.dtype)        # bf16 activation storage


# ---------------------------------------------------------------------------
# Glue: NHWC im2col (bf16, no transposes), per-layer wrapper, forward pass.
# ---------------------------------------------------------------------------
def _im2col_nhwc(x, k, stride, pad):
    """x: (N,H,W,C) bf16 -> bf16 patches (N*OH*OW, k*k*C), cols ordered (kh,kw,c)."""
    # TODO(synk): at realistic sizes (ndf=64), move this 16-tap gather into the
    # Pallas kernel (per-tap windows of the padded NHWC activation accumulated
    # in a f32 VMEM scratch) to avoid materializing the k*k patch matrix.
    n, h, w, c = x.shape
    xp = jnp.pad(x, ((0, 0), (pad, pad), (pad, pad), (0, 0)))
    oh = (h + 2 * pad - k) // stride + 1
    ow = (w + 2 * pad - k) // stride + 1
    cols = [xp[:, kh:kh + stride * oh:stride, kw:kw + stride * ow:stride, :]
            for kh in range(k) for kw in range(k)]
    patches = jnp.concatenate(cols, axis=-1).reshape(n * oh * ow, k * k * c)
    return patches, oh, ow


def conv_layer_forward(a_nhwc, p):
    """a_nhwc: bf16 (N,H,W,C) -> bf16 (N,OH,OW,OC)."""
    if p["in_pad"]:
        a_nhwc = jnp.pad(a_nhwc, ((0, 0), (0, 0), (0, 0), (0, p["in_pad"])))
    n = a_nhwc.shape[0]
    patches, oh, ow = _im2col_nhwc(a_nhwc, KW, p["stride"], PADW)
    m, k = patches.shape
    oc = p["w2d"].shape[1]

    # Two independent row tiles on large non-BN layers ("parallel" axis ->
    # shardable over v7x's two TensorCores). BN layers need all rows at once.
    ntiles = 2 if (not p["do_norm"] and m >= 256 and m % 16 == 0) else 1
    tm = m // ntiles

    in_specs = [pl.BlockSpec((tm, k), lambda i: (i, 0)),   # row tiles
                pl.BlockSpec((k, oc), lambda i: (0, 0))]   # weights resident
    args = [patches, p["w2d"]]
    if p["has_bias"]:
        in_specs.append(pl.BlockSpec((1, oc), lambda i: (0, 0)))
        args.append(p["b2d"])
    if p["do_norm"]:
        in_specs.append(pl.BlockSpec((1, oc), lambda i: (0, 0)))
        args.append(p["gamma2d"])
        in_specs.append(pl.BlockSpec((1, oc), lambda i: (0, 0)))
        args.append(p["beta2d"])

    kern = functools.partial(_layer_kernel, has_bias=p["has_bias"],
                             do_norm=p["do_norm"], do_act=p["do_act"],
                             inv_m=1.0 / m)
    y = pl.pallas_call(
        kern,
        grid=(ntiles,),
        in_specs=in_specs,
        out_specs=pl.BlockSpec((tm, oc), lambda i: (i, 0)),
        out_shape=jax.ShapeDtypeStruct((m, oc), jnp.bfloat16),
        compiler_params=pltpu.CompilerParams(
            dimension_semantics=("parallel",)),
    )(*args)
    return y.reshape(n, oh, ow, oc)


def build_params(key, input_nc, ndf=8, n_layers=3):
    """Mirror NLayerDiscriminator.__init__ (norm=BatchNorm2d -> use_bias=False)."""
    layer_defs = [(input_nc, ndf, 2, True, False, True)]
    nf_mult = 1
    for n in range(1, n_layers):
        nf_mult_prev, nf_mult = nf_mult, min(2 ** n, 8)
        layer_defs.append((ndf * nf_mult_prev, ndf * nf_mult, 2, False, True, True))
    nf_mult_prev, nf_mult = nf_mult, min(2 ** n_layers, 8)
    layer_defs.append((ndf * nf_mult_prev, ndf * nf_mult, 1, False, True, True))
    layer_defs.append((ndf * nf_mult, 1, 1, True, False, False))

    params = []
    keys = jax.random.split(key, 2 * len(layer_defs))
    for i, (ic, oc, stride, has_bias, do_norm, do_act) in enumerate(layer_defs):
        w = 0.02 * jax.random.normal(keys[2 * i], (oc, ic, KW, KW), jnp.float32)
        b = (0.01 * jax.random.normal(keys[2 * i + 1], (oc,), jnp.float32)
             if has_bias else jnp.zeros((oc,), jnp.float32))
        params.append(dict(
            w=w, b=b,
            gamma=jnp.ones((oc,), jnp.float32),
            beta=jnp.zeros((oc,), jnp.float32),
            stride=stride, has_bias=has_bias, do_norm=do_norm, do_act=do_act))
    return params


def prepare_params(params):
    """One-time kernel layout prep (constant-folded under jit):
    (OC,IC,KH,KW) -> (KH*KW*ICp, OC) bf16 with IC padded to a multiple of 8 so
    K is a multiple of 128 lanes (im2col column order is (kh, kw, c))."""
    prepped = []
    for p in params:
        oc, ic, kh, kw = p["w"].shape
        icp = _round_up(ic, 8)
        w2d = jnp.pad(p["w"].transpose(2, 3, 1, 0),
                      ((0, 0), (0, 0), (0, icp - ic), (0, 0)))
        w2d = w2d.reshape(kh * kw * icp, oc).astype(jnp.bfloat16)
        prepped.append(dict(
            w2d=w2d,
            b2d=p["b"].reshape(1, oc),
            gamma2d=p["gamma"].reshape(1, oc),
            beta2d=p["beta"].reshape(1, oc),
            in_pad=icp - ic,
            stride=p["stride"], has_bias=p["has_bias"],
            do_norm=p["do_norm"], do_act=p["do_act"]))
    return prepped


def nlayer_discriminator_forward(x_nchw, prepped):
    # NCHW -> NHWC + bf16 once at the model boundary; bf16 throughout.
    out = jnp.transpose(x_nchw, (0, 2, 3, 1)).astype(jnp.bfloat16)
    for p in prepped:
        out = conv_layer_forward(out, p)
    return jnp.transpose(out, (0, 3, 1, 2)).astype(jnp.float32)  # NCHW parity


# Pure-JAX reference (matched bf16 conv-operand precision, f32 accumulation).
def _ref_forward(x, params):
    out = x
    for p in params:
        conv = jax.lax.conv_general_dilated(
            out.astype(jnp.bfloat16), p["w"].astype(jnp.bfloat16),
            window_strides=(p["stride"],) * 2,
            padding=[(PADW, PADW), (PADW, PADW)],
            dimension_numbers=("NCHW", "OIHW", "NCHW"),
            preferred_element_type=jnp.float32)
        if p["has_bias"]:
            conv = conv + p["b"].reshape(1, -1, 1, 1)
        out = conv
        if p["do_norm"]:
            mean = out.mean(axis=(0, 2, 3), keepdims=True)
            var = ((out - mean) ** 2).mean(axis=(0, 2, 3), keepdims=True)
            out = (out - mean) * jax.lax.rsqrt(var + BN_EPS)
            out = out * p["gamma"].reshape(1, -1, 1, 1) + p["beta"].reshape(1, -1, 1, 1)
        if p["do_act"]:
            out = jnp.where(out > 0, out, 0.2 * out)
    return out


if __name__ == "__main__":
    key = jax.random.PRNGKey(0)
    kx, kp = jax.random.split(key)

    # 32x32 input so spatial survives three stride-2 convs (32->16->8->4->3->2).
    N, C, H, W = 2, 4, 32, 32
    x = jax.random.normal(kx, (N, C, H, W), jnp.float32)
    params = build_params(kp, input_nc=C, ndf=8, n_layers=3)
    prepped = prepare_params(params)

    fwd = jax.jit(lambda inp: nlayer_discriminator_forward(inp, prepped))
    out = jax.block_until_ready(fwd(x))
    assert out.shape == (N, 1, 2, 2), out.shape

    ref = jax.block_until_ready(_ref_forward(x, params))
    err = float(jnp.max(jnp.abs(out - ref)))
    assert jnp.allclose(out, ref, rtol=2e-2, atol=2e-2), err

    print("KERNEL_OK")
</pallas_src>

<mosaic_0001>
module attributes {stable_mosaic.version = 11 : i64} {
  func.func @_layer_kernel(%arg0: i32, %arg1: memref<256x128xbf16, #tpu.memory_space<vmem>>, %arg2: memref<128x8xbf16, #tpu.memory_space<vmem>>, %arg3: memref<1x8xf32, #tpu.memory_space<vmem>>, %arg4: memref<256x8xbf16, #tpu.memory_space<vmem>>) attributes {dimension_semantics = [#tpu.dimension_semantics<parallel>], iteration_bounds = array<i64: 2>, scalar_prefetch = 0 : i64, scratch_operands = 0 : i64, tpu.core_type = #tpu.core_type<tc>, window_params = [{transform_indices = @transform_0, window_bounds = array<i64: 256, 128>}, {pipeline_mode = #tpu.pipeline_mode<synchronous>, transform_indices = @transform_1, window_bounds = array<i64: 128, 8>}, {pipeline_mode = #tpu.pipeline_mode<synchronous>, transform_indices = @transform_2, window_bounds = array<i64: 1, 8>}, {transform_indices = @transform_3, window_bounds = array<i64: 256, 8>}]} {
    %c0 = arith.constant 0 : index
    %c0_0 = arith.constant 0 : index
    %0 = vector.load %arg1[%c0, %c0_0] : memref<256x128xbf16, #tpu.memory_space<vmem>>, vector<256x128xbf16>
    %c0_1 = arith.constant 0 : index
    %c0_2 = arith.constant 0 : index
    %1 = vector.load %arg2[%c0_1, %c0_2] : memref<128x8xbf16, #tpu.memory_space<vmem>>, vector<128x8xbf16>
    %cst = arith.constant dense<0.000000e+00> : vector<256x8xf32>
    %2 = tpu.matmul %0, %1, %cst {dimension_numbers = #tpu.dot_dimension_numbers<[1], [0], [0], [1], [0, 0, 1, 1], [], []>} : vector<256x128xbf16>, vector<128x8xbf16>, vector<256x8xf32> -> vector<256x8xf32>
    %c0_3 = arith.constant 0 : index
    %c0_4 = arith.constant 0 : index
    %3 = vector.load %arg3[%c0_3, %c0_4] : memref<1x8xf32, #tpu.memory_space<vmem>>, vector<1x8xf32>
    %4 = vector.broadcast %3 : vector<1x8xf32> to vector<256x8xf32>
    %5 = arith.addf %2, %4 : vector<256x8xf32>
    %cst_5 = arith.constant 0.000000e+00 : f32
    %6 = vector.broadcast %cst_5 : f32 to vector<256x8xf32>
    %7 = arith.cmpf ogt, %5, %6 : vector<256x8xf32>
    %cst_6 = arith.constant 2.000000e-01 : f32
    %8 = vector.broadcast %cst_6 : f32 to vector<256x8xf32>
    %9 = arith.mulf %8, %5 : vector<256x8xf32>
    %10 = arith.select %7, %5, %9 : vector<256x8xi1>, vector<256x8xf32>
    %11 = arith.truncf %10 : vector<256x8xf32> to vector<256x8xbf16>
    %c0_7 = arith.constant 0 : index
    %c0_8 = arith.constant 0 : index
    %12 = vector.load %arg4[%c0_7, %c0_8] : memref<256x8xbf16, #tpu.memory_space<vmem>>, vector<256x8xbf16>
    tpu.vector_store %arg4[%c0_7, %c0_8], %11 {strides = array<i32>} : memref<256x8xbf16, #tpu.memory_space<vmem>>, vector<256x8xbf16>,
    return
  }
  func.func @transform_0(%arg0: i32) -> (i32, i32) {
    %c0_i32 = arith.constant 0 : i32
    %c0_i32_0 = arith.constant 0 : i32
    return %arg0, %c0_i32 : i32, i32
  }
  func.func @transform_1(%arg0: i32) -> (i32, i32) {
    %c0_i32 = arith.constant 0 : i32
    %c0_i32_0 = arith.constant 0 : i32
    %c0_i32_1 = arith.constant 0 : i32
    return %c0_i32, %c0_i32_0 : i32, i32
  }
  func.func @transform_2(%arg0: i32) -> (i32, i32) {
    %c0_i32 = arith.constant 0 : i32
    %c0_i32_0 = arith.constant 0 : i32
    %c0_i32_1 = arith.constant 0 : i32
    return %c0_i32, %c0_i32_0 : i32, i32
  }
  func.func @transform_3(%arg0: i32) -> (i32, i32) {
    %c0_i32 = arith.constant 0 : i32
    %c0_i32_0 = arith.constant 0 : i32
    return %arg0, %c0_i32 : i32, i32
  }
}

module attributes {stable_mosaic.version = 11 : i64} {
  func.func @_layer_kernel(%arg0: i32, %arg1: memref<128x128xbf16, #tpu.memory_space<vmem>>, %arg2: memref<128x16xbf16, #tpu.memory_space<vmem>>, %arg3: memref<1x16xf32, #tpu.memory_space<vmem>>, %arg4: memref<1x16xf32, #tpu.memory_space<vmem>>, %arg5: memref<128x16xbf16, #tpu.memory_space<vmem>>) attributes {dimension_semantics = [#tpu.dimension_semantics<parallel>], iteration_bounds = array<i64: 1>, scalar_prefetch = 0 : i64, scratch_operands = 0 : i64, tpu.core_type = #tpu.core_type<tc>, window_params = [{transform_indices = @transform_0, window_bounds = array<i64: 128, 128>}, {pipeline_mode = #tpu.pipeline_mode<synchronous>, transform_indices = @transform_1, window_bounds = array<i64: 128, 16>}, {pipeline_mode = #tpu.pipeline_mode<synchronous>, transform_indices = @transform_2, window_bounds = array<i64: 1, 16>}, {pipeline_mode = #tpu.pipeline_mode<synchronous>, transform_indices = @transform_3, window_bounds = array<i64: 1, 16>}, {transform_indices = @transform_4, window_bounds = array<i64: 128, 16>}]} {
    %c0 = arith.constant 0 : index
    %c0_0 = arith.constant 0 : index
    %0 = vector.load %arg1[%c0, %c0_0] : memref<128x128xbf16, #tpu.memory_space<vmem>>, vector<128x128xbf16>
    %c0_1 = arith.constant 0 : index
    %c0_2 = arith.constant 0 : index
    %1 = vector.load %arg2[%c0_1, %c0_2] : memref<128x16xbf16, #tpu.memory_space<vmem>>, vector<128x16xbf16>
    %cst = arith.constant dense<0.000000e+00> : vector<128x16xf32>
    %2 = tpu.matmul %0, %1, %cst {dimension_numbers = #tpu.dot_dimension_numbers<[1], [0], [0], [1], [0, 0, 1, 1], [], []>} : vector<128x128xbf16>, vector<128x16xbf16>, vector<128x16xf32> -> vector<128x16xf32>
    %cst_3 = arith.constant dense<0.000000e+00> : vector<16xf32>
    %3 = vector.multi_reduction <add>, %2, %cst_3 [0] : vector<128x16xf32> to vector<16xf32>
    %4 = vector.shape_cast %3 : vector<16xf32> to vector<1x16xf32>
    %cst_4 = arith.constant 7.812500e-03 : f32
    %5 = vector.broadcast %cst_4 : f32 to vector<1x16xf32>
    %6 = arith.mulf %4, %5 : vector<1x16xf32>
    %7 = vector.broadcast %6 : vector<1x16xf32> to vector<128x16xf32>
    %8 = arith.subf %2, %7 : vector<128x16xf32>
    %9 = arith.mulf %8, %8 : vector<128x16xf32>
    %cst_5 = arith.constant dense<0.000000e+00> : vector<16xf32>
    %10 = vector.multi_reduction <add>, %9, %cst_5 [0] : vector<128x16xf32> to vector<16xf32>
    %11 = vector.shape_cast %10 : vector<16xf32> to vector<1x16xf32>
    %cst_6 = arith.constant 7.812500e-03 : f32
    %12 = vector.broadcast %cst_6 : f32 to vector<1x16xf32>
    %13 = arith.mulf %11, %12 : vector<1x16xf32>
    %c0_7 = arith.constant 0 : index
    %c0_8 = arith.constant 0 : index
    %14 = vector.load %arg3[%c0_7, %c0_8] : memref<1x16xf32, #tpu.memory_space<vmem>>, vector<1x16xf32>
    %cst_9 = arith.constant 9.99999974E-6 : f32
    %15 = vector.broadcast %cst_9 : f32 to vector<1x16xf32>
    %16 = arith.addf %13, %15 : vector<1x16xf32>
    %17 = math.rsqrt %16 : vector<1x16xf32>
    %18 = arith.mulf %14, %17 : vector<1x16xf32>
    %19 = vector.broadcast %18 : vector<1x16xf32> to vector<128x16xf32>
    %20 = arith.mulf %8, %19 : vector<128x16xf32>
    %c0_10 = arith.constant 0 : index
    %c0_11 = arith.constant 0 : index
    %21 = vector.load %arg4[%c0_10, %c0_11] : memref<1x16xf32, #tpu.memory_space<vmem>>, vector<1x16xf32>
    %22 = vector.broadcast %21 : vector<1x16xf32> to vector<128x16xf32>
    %23 = arith.addf %20, %22 : vector<128x16xf32>
    %cst_12 = arith.constant 0.000000e+00 : f32
    %24 = vector.broadcast %cst_12 : f32 to vector<128x16xf32>
    %25 = arith.cmpf ogt, %23, %24 : vector<128x16xf32>
    %cst_13 = arith.constant 2.000000e-01 : f32
    %26 = vector.broadcast %cst_13 : f32 to vector<128x16xf32>
    %27 = arith.mulf %26, %23 : vector<128x16xf32>
    %28 = arith.select %25, %23, %27 : vector<128x16xi1>, vector<128x16xf32>
    %29 = arith.truncf %28 : vector<128x16xf32> to vector<128x16xbf16>
    %c0_14 = arith.constant 0 : index
    %c0_15 = arith.constant 0 : index
    %30 = vector.load %arg5[%c0_14, %c0_15] : memref<128x16xbf16, #tpu.memory_space<vmem>>, vector<128x16xbf16>
    tpu.vector_store %arg5[%c0_14, %c0_15], %29 {strides = array<i32>} : memref<128x16xbf16, #tpu.memory_space<vmem>>, vector<128x16xbf16>,
    return
  }
  func.func @transform_0(%arg0: i32) -> (i32, i32) {
    %c0_i32 = arith.constant 0 : i32
    %c0_i32_0 = arith.constant 0 : i32
    return %arg0, %c0_i32 : i32, i32
  }
  func.func @transform_1(%arg0: i32) -> (i32, i32) {
    %c0_i32 = arith.constant 0 : i32
    %c0_i32_0 = arith.constant 0 : i32
    %c0_i32_1 = arith.constant 0 : i32
    return %c0_i32, %c0_i32_0 : i32, i32
  }
  func.func @transform_2(%arg0: i32) -> (i32, i32) {
    %c0_i32 = arith.constant 0 : i32
    %c0_i32_0 = arith.constant 0 : i32
    %c0_i32_1 = arith.constant 0 : i32
    return %c0_i32, %c0_i32_0 : i32, i32
  }
  func.func @transform_3(%arg0: i32) -> (i32, i32) {
    %c0_i32 = arith.constant 0 : i32
    %c0_i32_0 = arith.constant 0 : i32
    %c0_i32_1 = arith.constant 0 : i32
    return %c0_i32, %c0_i32_0 : i32, i32
  }
  func.func @transform_4(%arg0: i32) -> (i32, i32) {
    %c0_i32 = arith.constant 0 : i32
    %c0_i32_0 = arith.constant 0 : i32
    return %arg0, %c0_i32 : i32, i32
  }
}

module attributes {stable_mosaic.version = 11 : i64} {
  func.func @_layer_kernel(%arg0: i32, %arg1: memref<32x256xbf16, #tpu.memory_space<vmem>>, %arg2: memref<256x32xbf16, #tpu.memory_space<vmem>>, %arg3: memref<1x32xf32, #tpu.memory_space<vmem>>, %arg4: memref<1x32xf32, #tpu.memory_space<vmem>>, %arg5: memref<32x32xbf16, #tpu.memory_space<vmem>>) attributes {dimension_semantics = [#tpu.dimension_semantics<parallel>], iteration_bounds = array<i64: 1>, scalar_prefetch = 0 : i64, scratch_operands = 0 : i64, tpu.core_type = #tpu.core_type<tc>, window_params = [{transform_indices = @transform_0, window_bounds = array<i64: 32, 256>}, {pipeline_mode = #tpu.pipeline_mode<synchronous>, transform_indices = @transform_1, window_bounds = array<i64: 256, 32>}, {pipeline_mode = #tpu.pipeline_mode<synchronous>, transform_indices = @transform_2, window_bounds = array<i64: 1, 32>}, {pipeline_mode = #tpu.pipeline_mode<synchronous>, transform_indices = @transform_3, window_bounds = array<i64: 1, 32>}, {transform_indices = @transform_4, window_bounds = array<i64: 32, 32>}]} {
    %c0 = arith.constant 0 : index
    %c0_0 = arith.constant 0 : index
    %0 = vector.load %arg1[%c0, %c0_0] : memref<32x256xbf16, #tpu.memory_space<vmem>>, vector<32x256xbf16>
    %c0_1 = arith.constant 0 : index
    %c0_2 = arith.constant 0 : index
    %1 = vector.load %arg2[%c0_1, %c0_2] : memref<256x32xbf16, #tpu.memory_space<vmem>>, vector<256x32xbf16>
    %cst = arith.constant dense<0.000000e+00> : vector<32x32xf32>
    %2 = tpu.matmul %0, %1, %cst {dimension_numbers = #tpu.dot_dimension_numbers<[1], [0], [0], [1], [0, 0, 1, 1], [], []>} : vector<32x256xbf16>, vector<256x32xbf16>, vector<32x32xf32> -> vector<32x32xf32>
    %cst_3 = arith.constant dense<0.000000e+00> : vector<32xf32>
    %3 = vector.multi_reduction <add>, %2, %cst_3 [0] : vector<32x32xf32> to vector<32xf32>
    %4 = vector.shape_cast %3 : vector<32xf32> to vector<1x32xf32>
    %cst_4 = arith.constant 3.125000e-02 : f32
    %5 = vector.broadcast %cst_4 : f32 to vector<1x32xf32>
    %6 = arith.mulf %4, %5 : vector<1x32xf32>
    %7 = vector.broadcast %6 : vector<1x32xf32> to vector<32x32xf32>
    %8 = arith.subf %2, %7 : vector<32x32xf32>
    %9 = arith.mulf %8, %8 : vector<32x32xf32>
    %cst_5 = arith.constant dense<0.000000e+00> : vector<32xf32>
    %10 = vector.multi_reduction <add>, %9, %cst_5 [0] : vector<32x32xf32> to vector<32xf32>
    %11 = vector.shape_cast %10 : vector<32xf32> to vector<1x32xf32>
    %cst_6 = arith.constant 3.125000e-02 : f32
    %12 = vector.broadcast %cst_6 : f32 to vector<1x32xf32>
    %13 = arith.mulf %11, %12 : vector<1x32xf32>
    %c0_7 = arith.constant 0 : index
    %c0_8 = arith.constant 0 : index
    %14 = vector.load %arg3[%c0_7, %c0_8] : memref<1x32xf32, #tpu.memory_space<vmem>>, vector<1x32xf32>
    %cst_9 = arith.constant 9.99999974E-6 : f32
    %15 = vector.broadcast %cst_9 : f32 to vector<1x32xf32>
    %16 = arith.addf %13, %15 : vector<1x32xf32>
    %17 = math.rsqrt %16 : vector<1x32xf32>
    %18 = arith.mulf %14, %17 : vector<1x32xf32>
    %19 = vector.broadcast %18 : vector<1x32xf32> to vector<32x32xf32>
    %20 = arith.mulf %8, %19 : vector<32x32xf32>
    %c0_10 = arith.constant 0 : index
    %c0_11 = arith.constant 0 : index
    %21 = vector.load %arg4[%c0_10, %c0_11] : memref<1x32xf32, #tpu.memory_space<vmem>>, vector<1x32xf32>
    %22 = vector.broadcast %21 : vector<1x32xf32> to vector<32x32xf32>
    %23 = arith.addf %20, %22 : vector<32x32xf32>
    %cst_12 = arith.constant 0.000000e+00 : f32
    %24 = vector.broadcast %cst_12 : f32 to vector<32x32xf32>
    %25 = arith.cmpf ogt, %23, %24 : vector<32x32xf32>
    %cst_13 = arith.constant 2.000000e-01 : f32
    %26 = vector.broadcast %cst_13 : f32 to vector<32x32xf32>
    %27 = arith.mulf %26, %23 : vector<32x32xf32>
    %28 = arith.select %25, %23, %27 : vector<32x32xi1>, vector<32x32xf32>
    %29 = arith.truncf %28 : vector<32x32xf32> to vector<32x32xbf16>
    %c0_14 = arith.constant 0 : index
    %c0_15 = arith.constant 0 : index
    %30 = vector.load %arg5[%c0_14, %c0_15] : memref<32x32xbf16, #tpu.memory_space<vmem>>, vector<32x32xbf16>
    tpu.vector_store %arg5[%c0_14, %c0_15], %29 {strides = array<i32>} : memref<32x32xbf16, #tpu.memory_space<vmem>>, vector<32x32xbf16>,
    return
  }
  func.func @transform_0(%arg0: i32) -> (i32, i32) {
    %c0_i32 = arith.constant 0 : i32
    %c0_i32_0 = arith.constant 0 : i32
    return %arg0, %c0_i32 : i32, i32
  }
  func.func @transform_1(%arg0: i32) -> (i32, i32) {
    %c0_i32 = arith.constant 0 : i32
    %c0_i32_0 = arith.constant 0 : i32
    %c0_i32_1 = arith.constant 0 : i32
    return %c0_i32, %c0_i32_0 : i32, i32
  }
  func.func @transform_2(%arg0: i32) -> (i32, i32) {
    %c0_i32 = arith.constant 0 : i32
    %c0_i32_0 = arith.constant 0 : i32
    %c0_i32_1 = arith.constant 0 : i32
    return %c0_i32, %c0_i32_0 : i32, i32
  }
  func.func @transform_3(%arg0: i32) -> (i32, i32) {
    %c0_i32 = arith.constant 0 : i32
    %c0_i32_0 = arith.constant 0 : i32
    %c0_i32_1 = arith.constant 0 : i32
    return %c0_i32, %c0_i32_0 : i32, i32
  }
  func.func @transform_4(%arg0: i32) -> (i32, i32) {
    %c0_i32 = arith.constant 0 : i32
    %c0_i32_0 = arith.constant 0 : i32
    return %arg0, %c0_i32 : i32, i32
  }
}

module attributes {stable_mosaic.version = 11 : i64} {
  func.func @_layer_kernel(%arg0: i32, %arg1: memref<18x512xbf16, #tpu.memory_space<vmem>>, %arg2: memref<512x64xbf16, #tpu.memory_space<vmem>>, %arg3: memref<1x64xf32, #tpu.memory_space<vmem>>, %arg4: memref<1x64xf32, #tpu.memory_space<vmem>>, %arg5: memref<18x64xbf16, #tpu.memory_space<vmem>>) attributes {dimension_semantics = [#tpu.dimension_semantics<parallel>], iteration_bounds = array<i64: 1>, scalar_prefetch = 0 : i64, scratch_operands = 0 : i64, tpu.core_type = #tpu.core_type<tc>, window_params = [{transform_indices = @transform_0, window_bounds = array<i64: 18, 512>}, {pipeline_mode = #tpu.pipeline_mode<synchronous>, transform_indices = @transform_1, window_bounds = array<i64: 512, 64>}, {pipeline_mode = #tpu.pipeline_mode<synchronous>, transform_indices = @transform_2, window_bounds = array<i64: 1, 64>}, {pipeline_mode = #tpu.pipeline_mode<synchronous>, transform_indices = @transform_3, window_bounds = array<i64: 1, 64>}, {transform_indices = @transform_4, window_bounds = array<i64: 18, 64>}]} {
    %c0 = arith.constant 0 : index
    %c0_0 = arith.constant 0 : index
    %0 = vector.load %arg1[%c0, %c0_0] : memref<18x512xbf16, #tpu.memory_space<vmem>>, vector<18x512xbf16>
    %c0_1 = arith.constant 0 : index
    %c0_2 = arith.constant 0 : index
    %1 = vector.load %arg2[%c0_1, %c0_2] : memref<512x64xbf16, #tpu.memory_space<vmem>>, vector<512x64xbf16>
    %cst = arith.constant dense<0.000000e+00> : vector<18x64xf32>
    %2 = tpu.matmul %0, %1, %cst {dimension_numbers = #tpu.dot_dimension_numbers<[1], [0], [0], [1], [0, 0, 1, 1], [], []>} : vector<18x512xbf16>, vector<512x64xbf16>, vector<18x64xf32> -> vector<18x64xf32>
    %cst_3 = arith.constant dense<0.000000e+00> : vector<64xf32>
    %3 = vector.multi_reduction <add>, %2, %cst_3 [0] : vector<18x64xf32> to vector<64xf32>
    %4 = vector.shape_cast %3 : vector<64xf32> to vector<1x64xf32>
    %cst_4 = arith.constant 0.055555556 : f32
    %5 = vector.broadcast %cst_4 : f32 to vector<1x64xf32>
    %6 = arith.mulf %4, %5 : vector<1x64xf32>
    %7 = vector.broadcast %6 : vector<1x64xf32> to vector<18x64xf32>
    %8 = arith.subf %2, %7 : vector<18x64xf32>
    %9 = arith.mulf %8, %8 : vector<18x64xf32>
    %cst_5 = arith.constant dense<0.000000e+00> : vector<64xf32>
    %10 = vector.multi_reduction <add>, %9, %cst_5 [0] : vector<18x64xf32> to vector<64xf32>
    %11 = vector.shape_cast %10 : vector<64xf32> to vector<1x64xf32>
    %cst_6 = arith.constant 0.055555556 : f32
    %12 = vector.broadcast %cst_6 : f32 to vector<1x64xf32>
    %13 = arith.mulf %11, %12 : vector<1x64xf32>
    %c0_7 = arith.constant 0 : index
    %c0_8 = arith.constant 0 : index
    %14 = vector.load %arg3[%c0_7, %c0_8] : memref<1x64xf32, #tpu.memory_space<vmem>>, vector<1x64xf32>
    %cst_9 = arith.constant 9.99999974E-6 : f32
    %15 = vector.broadcast %cst_9 : f32 to vector<1x64xf32>
    %16 = arith.addf %13, %15 : vector<1x64xf32>
    %17 = math.rsqrt %16 : vector<1x64xf32>
    %18 = arith.mulf %14, %17 : vector<1x64xf32>
    %19 = vector.broadcast %18 : vector<1x64xf32> to vector<18x64xf32>
    %20 = arith.mulf %8, %19 : vector<18x64xf32>
    %c0_10 = arith.constant 0 : index
    %c0_11 = arith.constant 0 : index
    %21 = vector.load %arg4[%c0_10, %c0_11] : memref<1x64xf32, #tpu.memory_space<vmem>>, vector<1x64xf32>
    %22 = vector.broadcast %21 : vector<1x64xf32> to vector<18x64xf32>
    %23 = arith.addf %20, %22 : vector<18x64xf32>
    %cst_12 = arith.constant 0.000000e+00 : f32
    %24 = vector.broadcast %cst_12 : f32 to vector<18x64xf32>
    %25 = arith.cmpf ogt, %23, %24 : vector<18x64xf32>
    %cst_13 = arith.constant 2.000000e-01 : f32
    %26 = vector.broadcast %cst_13 : f32 to vector<18x64xf32>
    %27 = arith.mulf %26, %23 : vector<18x64xf32>
    %28 = arith.select %25, %23, %27 : vector<18x64xi1>, vector<18x64xf32>
    %29 = arith.truncf %28 : vector<18x64xf32> to vector<18x64xbf16>
    %c0_14 = arith.constant 0 : index
    %c0_15 = arith.constant 0 : index
    %30 = vector.load %arg5[%c0_14, %c0_15] : memref<18x64xbf16, #tpu.memory_space<vmem>>, vector<18x64xbf16>
    tpu.vector_store %arg5[%c0_14, %c0_15], %29 {strides = array<i32>} : memref<18x64xbf16, #tpu.memory_space<vmem>>, vector<18x64xbf16>,
    return
  }
  func.func @transform_0(%arg0: i32) -> (i32, i32) {
    %c0_i32 = arith.constant 0 : i32
    %c0_i32_0 = arith.constant 0 : i32
    return %arg0, %c0_i32 : i32, i32
  }
  func.func @transform_1(%arg0: i32) -> (i32, i32) {
    %c0_i32 = arith.constant 0 : i32
    %c0_i32_0 = arith.constant 0 : i32
    %c0_i32_1 = arith.constant 0 : i32
    return %c0_i32, %c0_i32_0 : i32, i32
  }
  func.func @transform_2(%arg0: i32) -> (i32, i32) {
    %c0_i32 = arith.constant 0 : i32
    %c0_i32_0 = arith.constant 0 : i32
    %c0_i32_1 = arith.constant 0 : i32
    return %c0_i32, %c0_i32_0 : i32, i32
  }
  func.func @transform_3(%arg0: i32) -> (i32, i32) {
    %c0_i32 = arith.constant 0 : i32
    %c0_i32_0 = arith.constant 0 : i32
    %c0_i32_1 = arith.constant 0 : i32
    return %c0_i32, %c0_i32_0 : i32, i32
  }
  func.func @transform_4(%arg0: i32) -> (i32, i32) {
    %c0_i32 = arith.constant 0 : i32
    %c0_i32_0 = arith.constant 0 : i32
    return %arg0, %c0_i32 : i32, i32
  }
}

module attributes {stable_mosaic.version = 11 : i64} {
  func.func @_layer_kernel(%arg0: i32, %arg1: memref<8x1024xbf16, #tpu.memory_space<vmem>>, %arg2: memref<1024x1xbf16, #tpu.memory_space<vmem>>, %arg3: memref<1x1xf32, #tpu.memory_space<vmem>>, %arg4: memref<8x1xbf16, #tpu.memory_space<vmem>>) attributes {dimension_semantics = [#tpu.dimension_semantics<parallel>], iteration_bounds = array<i64: 1>, scalar_prefetch = 0 : i64, scratch_operands = 0 : i64, tpu.core_type = #tpu.core_type<tc>, window_params = [{transform_indices = @transform_0, window_bounds = array<i64: 8, 1024>}, {pipeline_mode = #tpu.pipeline_mode<synchronous>, transform_indices = @transform_1, window_bounds = array<i64: 1024, 1>}, {pipeline_mode = #tpu.pipeline_mode<synchronous>, transform_indices = @transform_2, window_bounds = array<i64: 1, 1>}, {transform_indices = @transform_3, window_bounds = array<i64: 8, 1>}]} {
    %c0 = arith.constant 0 : index
    %c0_0 = arith.constant 0 : index
    %0 = vector.load %arg1[%c0, %c0_0] : memref<8x1024xbf16, #tpu.memory_space<vmem>>, vector<8x1024xbf16>
    %c0_1 = arith.constant 0 : index
    %c0_2 = arith.constant 0 : index
    %1 = vector.load %arg2[%c0_1, %c0_2] : memref<1024x1xbf16, #tpu.memory_space<vmem>>, vector<1024x1xbf16>
    %cst = arith.constant dense<0.000000e+00> : vector<8x1xf32>
    %2 = tpu.matmul %0, %1, %cst {dimension_numbers = #tpu.dot_dimension_numbers<[1], [0], [0], [1], [0, 0, 1, 1], [], []>} : vector<8x1024xbf16>, vector<1024x1xbf16>, vector<8x1xf32> -> vector<8x1xf32>
    %c0_3 = arith.constant 0 : index
    %c0_4 = arith.constant 0 : index
    %3 = vector.load %arg3[%c0_3, %c0_4] : memref<1x1xf32, #tpu.memory_space<vmem>>, vector<1x1xf32>
    %4 = vector.broadcast %3 : vector<1x1xf32> to vector<8x1xf32>
    %5 = arith.addf %2, %4 : vector<8x1xf32>
    %6 = arith.truncf %5 : vector<8x1xf32> to vector<8x1xbf16>
    %c0_5 = arith.constant 0 : index
    %c0_6 = arith.constant 0 : index
    %7 = vector.load %arg4[%c0_5, %c0_6] : memref<8x1xbf16, #tpu.memory_space<vmem>>, vector<8x1xbf16>
    tpu.vector_store %arg4[%c0_5, %c0_6], %6 {strides = array<i32>} : memref<8x1xbf16, #tpu.memory_space<vmem>>, vector<8x1xbf16>,
    return
  }
  func.func @transform_0(%arg0: i32) -> (i32, i32) {
    %c0_i32 = arith.constant 0 : i32
    %c0_i32_0 = arith.constant 0 : i32
    return %arg0, %c0_i32 : i32, i32
  }
  func.func @transform_1(%arg0: i32) -> (i32, i32) {
    %c0_i32 = arith.constant 0 : i32
    %c0_i32_0 = arith.constant 0 : i32
    %c0_i32_1 = arith.constant 0 : i32
    return %c0_i32, %c0_i32_0 : i32, i32
  }
  func.func @transform_2(%arg0: i32) -> (i32, i32) {
    %c0_i32 = arith.constant 0 : i32
    %c0_i32_0 = arith.constant 0 : i32
    %c0_i32_1 = arith.constant 0 : i32
    return %c0_i32, %c0_i32_0 : i32, i32
  }
  func.func @transform_3(%arg0: i32) -> (i32, i32) {
    %c0_i32 = arith.constant 0 : i32
    %c0_i32_0 = arith.constant 0 : i32
    return %arg0, %c0_i32 : i32, i32
  }
}

</mosaic_0001>

<bundles_post_ra>
// kernel: _lambda_.5
= control target key start
LH: loop header
LB: loop body
LE: loop exit
PB: predicated region body
PF: predicated region fallthrough
CT: control target
= control target key end

     0   :  { %s1096_s12 = smov 0   ;;  %s1266_s0 = inlined_call_operand.vmem [shape: bf16[512,128], index: 0, kind: input, shape index: {}]   ;;  %s1267_s1 = inlined_call_operand.vmem [shape: bf16[128,8], index: 1, kind: input, shape index: {}]   ;;  %s1268_s2 = inlined_call_operand.vmem [shape: f32[1,8], index: 2, kind: input, shape index: {}]   ;;  %s1269_s3 = inlined_call_operand.vmem [shape: bf16[512,8], index: 3, kind: output, shape index: {}]  }
   0x1 LB: > { %s848_s13 = sadd.s32 4294967295, %s1074_s12   ;;  %p852_p0 = scmp.ge.s32.totalorder %s1074_s12, 1  ;;  %s1074_s12 = sphi %s1096_s12, %s13_s12  }
   0x2   : > { %p138_p1 = scmp.lt.s32.totalorder %s1074_s12, 3 }
   0x4   : > { %p139_p2 = pnand %p852_p0, %p138_p1 }
   0x5   : > { %v1044_v0 = vld [vmem:[%s1267_s1] sm:$0xff] (!%p139_p2)   ;;  %s853_s16 = sshll.u32 (!%p139_p2), %s848_s13, 5  ;;  %v1045_v1 = vld [vmem:[%s1267_s1 + $0x8] sm:$0xff] (!%p139_p2)   ;;  %v1046_v2 = vld [vmem:[%s1267_s1 + $0x10] sm:$0xff] (!%p139_p2)   ;;  %vm759_vm0 = vcmask (!%p139_p2), 60416  }
   0x6   : > { %142 = sbr.rel (%p139_p2) target bundleno = 296 (0x128), region = 32  ;;  %p163_p3 = scmp.lt.s32.totalorder (!%p139_p2), %s853_s16, 63  ;;  %972 = vmatprep.subr.bf16.mxu0 (!%p139_p2), %v1044_v0  ;;  %1020 = vmatprep.subr.bf16.mxu1 (!%p139_p2), %v1044_v0  ;;  %v1047_v3 = vld [vmem:[%s1267_s1 + $0x18] sm:$0xff] (!%p139_p2)   ;;  %v1048_v6 = vld [vmem:[%s1267_s1 + $0x20] sm:$0xff] (!%p139_p2)   ;;  %v1049_v7 = vld [vmem:[%s1267_s1 + $0x28] sm:$0xff] (!%p139_p2)  }
   0x7   : > { %973 = vmatpush3.bf16.msra.mxu0 (!%p139_p2), %v1044_v0  ;;  %1028 = vmatpush3.bf16.msra.mxu1 (!%p139_p2), %v1044_v0  ;;  %v1050_v8 = vld [vmem:[%s1267_s1 + $0x30] sm:$0xff] (!%p139_p2)   ;;  %v1051_v9 = vld [vmem:[%s1267_s1 + $0x38] sm:$0xff] (!%p139_p2)   ;;  %v1157_v24 = vld [vmem:[%s1268_s2] ss:$0 sm:$0xff] (!%p139_p2) }
   0x8   : > { %974 = vmatprep.subr.bf16.mxu0 (!%p139_p2), %v1045_v1  ;;  %1021 = vmatprep.subr.bf16.mxu1 (!%p139_p2), %v1045_v1 }
   0xb   : > { %975 = vmatpush3.bf16.msra.mxu0 (!%p139_p2), %v1045_v1  ;;  %1029 = vmatpush3.bf16.msra.mxu1 (!%p139_p2), %v1045_v1 }
   0xc   : > { %976 = vmatprep.subr.bf16.mxu0 (!%p139_p2), %v1046_v2  ;;  %1022 = vmatprep.subr.bf16.mxu1 (!%p139_p2), %v1046_v2 }
   0xd   : > { %s1271_s16 = smov (!%p163_p3, %s853_s16), 63 }
   0xe   : > { %s854_s21 = sshll.u32 %s1271_s16, 2 }
   0xf   : > { %s1121_s24 = scalar_lea.vmem %s1266_s0, %s854_s21  ;;  %977 = vmatpush3.bf16.msra.mxu0 %v1046_v2  ;;  %1030 = vmatpush3.bf16.msra.mxu1 %v1046_v2  ;;  %s1168_s13 = scalar_lea.vmem %s1269_s3, %s854_s21 }
  0x10   : > { %v1052_v4 = vld [vmem:[%s1121_s24] sm:$0xff]   ;;  %978 = vmatprep.subr.bf16.mxu0 %v1047_v3  ;;  %1023 = vmatprep.subr.bf16.mxu1 %v1047_v3  ;;  %v1054_v10 = vld [vmem:[%s1121_s24 + $0x8] sm:$0xff]   ;;  %v1056_v12 = vld [vmem:[%s1121_s24 + $0x10] sm:$0xff]  }
  0x11   : > { %v1053_v5 = vld [vmem:[%s1121_s24 + $0x40] sm:$0xff]   ;;  %988 = vmatprep.mubr.bf16.mxu0 %v1052_v4  ;;  %v1055_v11 = vld [vmem:[%s1121_s24 + $0x48] sm:$0xff]   ;;  %v1057_v13 = vld [vmem:[%s1121_s24 + $0x50] sm:$0xff]  }
  0x12   : > { %1004 = vmatprep.mubr.bf16.mxu1 %v1053_v5  ;;  %v1058_v14 = vld [vmem:[%s1121_s24 + $0x18] sm:$0xff]   ;;  %v1060_v16 = vld [vmem:[%s1121_s24 + $0x20] sm:$0xff]   ;;  %v1062_v18 = vld [vmem:[%s1121_s24 + $0x28] sm:$0xff]  }
  0x13   : > { %979 = vmatpush3.bf16.msra.mxu0 %v1047_v3  ;;  %1031 = vmatpush3.bf16.msra.mxu1 %v1047_v3  ;;  %v1059_v15 = vld [vmem:[%s1121_s24 + $0x58] sm:$0xff]   ;;  %v1061_v17 = vld [vmem:[%s1121_s24 + $0x60] sm:$0xff]   ;;  %v1063_v19 = vld [vmem:[%s1121_s24 + $0x68] sm:$0xff]  }
  0x14   : > { %980 = vmatprep.subr.bf16.mxu0 %v1048_v6  ;;  %1024 = vmatprep.subr.bf16.mxu1 %v1048_v6  ;;  %v1064_v20 = vld [vmem:[%s1121_s24 + $0x30] sm:$0xff]   ;;  %v1066_v22 = vld [vmem:[%s1121_s24 + $0x38] sm:$0xff]  }
  0x15   : > { %v1065_v21 = vld [vmem:[%s1121_s24 + $0x70] sm:$0xff]   ;;  %v1067_v23 = vld [vmem:[%s1121_s24 + $0x78] sm:$0xff]  }
  0x17   : > { %981 = vmatpush3.bf16.msra.mxu0 %v1048_v6  ;;  %1032 = vmatpush3.bf16.msra.mxu1 %v1048_v6 }
  0x18   : > { %982 = vmatprep.subr.bf16.mxu0 %v1049_v7  ;;  %1025 = vmatprep.subr.bf16.mxu1 %v1049_v7 }
  0x1b   : > { %983 = vmatpush3.bf16.msra.mxu0 %v1049_v7  ;;  %1033 = vmatpush3.bf16.msra.mxu1 %v1049_v7 }
  0x1c   : > { %984 = vmatprep.subr.bf16.mxu0 %v1050_v8  ;;  %1026 = vmatprep.subr.bf16.mxu1 %v1050_v8 }
  0x1f   : > { %985 = vmatpush3.bf16.msra.mxu0 %v1050_v8  ;;  %1034 = vmatpush3.bf16.msra.mxu1 %v1050_v8 }
  0x20   : > { %986 = vmatprep.subr.bf16.mxu0 %v1051_v9  ;;  %1027 = vmatprep.subr.bf16.mxu1 %v1051_v9 }
  0x23   : > { %987 = vmatpush3.bf16.msra.mxu0 %v1051_v9  ;;  %1035 = vmatpush3.bf16.msra.mxu1 %v1051_v9 }
  0x26   : > { %989 = vmatmul.mubr.bf16.vlgmr.msra.gmra.mrb[0].mxu0 %v1054_v10  ;;  %1005 = vmatmul.mubr.bf16.vlgmr.msra.gmra.mrb[0].mxu1 %v1055_v11 }
  0x27   : > { %992 = vmatprep.mubr.bf16.mxu0 %v1056_v12  ;;  %1008 = vmatprep.mubr.bf16.mxu1 %v1057_v13 }
  0x2e   : > { %993 = vmatmul.mubr.bf16.gmra.mrb[4].mxu0 %v1058_v14  ;;  %1009 = vmatmul.mubr.bf16.gmra.mrb[4].mxu1 %v1059_v15 }
  0x2f   : > { %996 = vmatprep.mubr.bf16.mxu0 %v1060_v16  ;;  %1012 = vmatprep.mubr.bf16.mxu1 %v1061_v17 }
  0x36   : > { %997 = vmatmul.mubr.bf16.gmra.mrb[8].mxu0 %v1062_v18  ;;  %1013 = vmatmul.mubr.bf16.gmra.mrb[8].mxu1 %v1063_v19 }
  0x37   : > { %1000 = vmatprep.mubr.bf16.mxu0 %v1064_v20  ;;  %1016 = vmatprep.mubr.bf16.mxu1 %v1065_v21 }
  0x3e   : > { %1001 = vmatmul.mubr.bf16.gmra.mrb[12].mxu0 %v1066_v22  ;;  %1017 = vmatmul.mubr.bf16.gmra.mrb[12].mxu1 %v1067_v23 }
  0xf9   : > { %v990_v25 = vpop.f32.mrb[0].mxu0  ;;  %v1006_v26 = vpop.f32.mrb[0].mxu1 }
  0xfa   : > { %v417_v27 = vadd.f32 %v990_v25, %v1157_v24  ;;  %v481_v28 = vadd.f32 %v1006_v26, %v1157_v24  ;;  %v408_v29 = vpop.f32.mrb[1].mxu0  ;;  %v472_v30 = vpop.f32.mrb[1].mxu1 }
  0xfb   : > { %v409_v31 = vadd.f32 %v1157_v24, %v408_v29  ;;  %v473_v32 = vadd.f32 %v1157_v24, %v472_v30  ;;  %v991_v33 = vpop.f32.mrb[2].mxu0  ;;  %v1007_v34 = vpop.f32.mrb[2].mxu1 }
  0xfc   : > { %vm537_vm1 = vcmp.gt.f32.partialorder %v417_v27, 0.0  ;;  %v569_v35 = vmul.f32 0.2, %v417_v27  ;;  %vm553_vm2 = vcmp.gt.f32.partialorder %v481_v28, 0.0  ;;  %v585_v36 = vmul.f32 0.2, %v481_v28 }
  0xfd   : > { %vm535_vm3 = vcmp.gt.f32.partialorder %v409_v31, 0.0  ;;  %v567_v37 = vmul.f32 0.2, %v409_v31  ;;  %vm551_vm4 = vcmp.gt.f32.partialorder %v473_v32, 0.0  ;;  %v583_v38 = vmul.f32 0.2, %v473_v32 }
  0xfe   : > { %v601_v39 = vsel %vm537_vm1, %v417_v27, %v569_v35  ;;  %v617_v40 = vsel %vm553_vm2, %v481_v28, %v585_v36  ;;  %v420_v41 = vadd.f32 %v991_v33, %v1157_v24  ;;  %v484_v42 = vadd.f32 %v1007_v34, %v1157_v24  ;;  %v411_v43 = vpop.f32.mrb[3].mxu0  ;;  %v475_v44 = vpop.f32.mrb[3].mxu1 }
  0xff   : > { %v918_v45 = vpack.c.bf16 %v601_v39, %v601_v39  ;;  %v934_v46 = vpack.c.bf16 %v617_v40, %v617_v40  ;;  %v599_v47 = vsel %vm535_vm3, %v409_v31, %v567_v37  ;;  %v615_v48 = vsel %vm551_vm4, %v473_v32, %v583_v38 }
 0x100   : > { %v916_v49 = vpack.c.bf16 %v599_v47, %v599_v47  ;;  %v932_v50 = vpack.c.bf16 %v615_v48, %v615_v48  ;;  %vm538_vm5 = vcmp.gt.f32.partialorder %v420_v41, 0.0  ;;  %v570_v51 = vmul.f32 0.2, %v420_v41 }
 0x101   : > { %762 = vst.msk [vmem:[%s1168_s13 + $0x8] sm:$0xf] %vm759_vm0, %v918_v45  ;;  %778 = vst.msk [vmem:[%s1168_s13 + $0x48] sm:$0xf] %vm759_vm0, %v934_v46  ;;  %vm554_vm6 = vcmp.gt.f32.partialorder %v484_v42, 0.0  ;;  %v412_v53 = vadd.f32 %v1157_v24, %v411_v43  ;;  %v476_v54 = vadd.f32 %v1157_v24, %v475_v44  ;;  %v994_v55 = vpop.f32.mrb[4].mxu0 }
 0x102   : > { %v586_v52 = vmul.f32 0.2, %v484_v42  ;;  %v1010_v56 = vpop.f32.mrb[4].mxu1  ;;  %760 = vst.msk [vmem:[%s1168_s13] sm:$0xf] %vm759_vm0, %v916_v49  ;;  %v602_v57 = vsel %vm538_vm5, %v420_v41, %v570_v51  ;;  %v433_v58 = vadd.f32 %v994_v55, %v1157_v24  ;;  %v424_v60 = vpop.f32.mrb[5].mxu0 }
 0x103   : > { %776 = vst.msk [vmem:[%s1168_s13 + $0x40] sm:$0xf] %vm759_vm0, %v932_v50  ;;  %v497_v59 = vadd.f32 %v1010_v56, %v1157_v24  ;;  %v488_v61 = vpop.f32.mrb[5].mxu1  ;;  %v919_v62 = vpack.c.bf16 %v602_v57, %v602_v57  ;;  %vm536_vm7 = vcmp.gt.f32.partialorder %v412_v53, 0.0  ;;  %v568_v0 = vmul.f32 0.2, %v412_v53 }
 0x104   : > { %v618_v63 = vsel %vm554_vm6, %v484_v42, %v586_v52  ;;  %v995_v1 = vpop.f32.mrb[6].mxu0  ;;  %v1011_v2 = vpop.f32.mrb[6].mxu1  ;;  %vm552_vm8 = vcmp.gt.f32.partialorder %v476_v54, 0.0  ;;  %v584_v4 = vmul.f32 0.2, %v476_v54  ;;  %vm541_vm9 = vcmp.gt.f32.partialorder %v433_v58, 0.0 }
 0x105   : > { %v935_v3 = vpack.c.bf16 %v618_v63, %v618_v63  ;;  %v427_v5 = vpop.f32.mrb[7].mxu0  ;;  %v491_v6 = vpop.f32.mrb[7].mxu1  ;;  %763 = vst.msk [vmem:[%s1168_s13 + $0xc] sm:$0xf] %vm759_vm0, %v919_v62  ;;  %v600_v7 = vsel %vm536_vm7, %v412_v53, %v568_v0  ;;  %v573_v8 = vmul.f32 0.2, %v433_v58  ;;  %v425_v12 = vadd.f32 %v1157_v24, %v424_v60 }
 0x106   : > { %vm557_vm10 = vcmp.gt.f32.partialorder %v497_v59, 0.0  ;;  %v589_v9 = vmul.f32 0.2, %v497_v59  ;;  %v917_v10 = vpack.c.bf16 %v600_v7, %v600_v7  ;;  %v616_v11 = vsel %vm552_vm8, %v476_v54, %v584_v4 }
 0x107   : > { %779 = vst.msk [vmem:[%s1168_s13 + $0x4c] sm:$0xf] %vm759_vm0, %v935_v3  ;;  %v489_v13 = vadd.f32 %v1157_v24, %v488_v61  ;;  %v933_v14 = vpack.c.bf16 %v616_v11, %v616_v11  ;;  %v605_v15 = vsel %vm541_vm9, %v433_v58, %v573_v8  ;;  %v436_v17 = vadd.f32 %v995_v1, %v1157_v24 }
 0x108   : > { %v621_v16 = vsel %vm557_vm10, %v497_v59, %v589_v9  ;;  %761 = vst.msk [vmem:[%s1168_s13 + $0x4] sm:$0xf] %vm759_vm0, %v917_v10  ;;  %v922_v18 = vpack.c.bf16 %v605_v15, %v605_v15  ;;  %vm539_vm11 = vcmp.gt.f32.partialorder %v425_v12, 0.0  ;;  %v571_v20 = vmul.f32 0.2, %v425_v12 }
 0x109   : > { %v938_v19 = vpack.c.bf16 %v621_v16, %v621_v16  ;;  %777 = vst.msk [vmem:[%s1168_s13 + $0x44] sm:$0xf] %vm759_vm0, %v933_v14  ;;  %vm555_vm12 = vcmp.gt.f32.partialorder %v489_v13, 0.0  ;;  %v587_v21 = vmul.f32 0.2, %v489_v13  ;;  %vm542_vm13 = vcmp.gt.f32.partialorder %v436_v17, 0.0 }
 0x10a   : > { %v574_v22 = vmul.f32 0.2, %v436_v17  ;;  %766 = vst.msk [vmem:[%s1168_s13 + $0x18] sm:$0xf] %vm759_vm0, %v922_v18  ;;  %v603_v23 = vsel %vm539_vm11, %v425_v12, %v571_v20  ;;  %v500_v25 = vadd.f32 %v1011_v2, %v1157_v24  ;;  %v428_v26 = vadd.f32 %v1157_v24, %v427_v5  ;;  %v998_v28 = vpop.f32.mrb[8].mxu0  ;;  %v1014_v29 = vpop.f32.mrb[8].mxu1 }
 0x10b   : > { %782 = vst.msk [vmem:[%s1168_s13 + $0x58] sm:$0xf] %vm759_vm0, %v938_v19  ;;  %v492_v27 = vadd.f32 %v1157_v24, %v491_v6  ;;  %v920_v30 = vpack.c.bf16 %v603_v23, %v603_v23  ;;  %v619_v31 = vsel %vm555_vm12, %v489_v13, %v587_v21  ;;  %v449_v33 = vadd.f32 %v998_v28, %v1157_v24  ;;  %v440_v34 = vpop.f32.mrb[9].mxu0  ;;  %v504_v35 = vpop.f32.mrb[9].mxu1 }
 0x10c   : > { %v606_v32 = vsel %vm542_vm13, %v436_v17, %v574_v22  ;;  %v936_v36 = vpack.c.bf16 %v619_v31, %v619_v31  ;;  %vm558_vm14 = vcmp.gt.f32.partialorder %v500_v25, 0.0  ;;  %v590_v38 = vmul.f32 0.2, %v500_v25  ;;  %v999_v39 = vpop.f32.mrb[10].mxu0  ;;  %v1015_v40 = vpop.f32.mrb[10].mxu1 }
 0x10d   : > { %v923_v37 = vpack.c.bf16 %v606_v32, %v606_v32  ;;  %764 = vst.msk [vmem:[%s1168_s13 + $0x10] sm:$0xf] %vm759_vm0, %v920_v30  ;;  %vm540_vm15 = vcmp.gt.f32.partialorder %v428_v26, 0.0  ;;  %v572_v41 = vmul.f32 0.2, %v428_v26  ;;  %vm556_vm1 = vcmp.gt.f32.partialorder %v492_v27, 0.0 }
 0x10e   : > { %v588_v42 = vmul.f32 0.2, %v492_v27  ;;  %780 = vst.msk [vmem:[%s1168_s13 + $0x50] sm:$0xf] %vm759_vm0, %v936_v36  ;;  %v622_v43 = vsel %vm558_vm14, %v500_v25, %v590_v38  ;;  %vm545_vm2 = vcmp.gt.f32.partialorder %v449_v33, 0.0  ;;  %v513_v45 = vadd.f32 %v1014_v29, %v1157_v24  ;;  %v443_v46 = vpop.f32.mrb[11].mxu0 }
 0x10f   : > { %767 = vst.msk [vmem:[%s1168_s13 + $0x1c] sm:$0xf] %vm759_vm0, %v923_v37  ;;  %v577_v44 = vmul.f32 0.2, %v449_v33  ;;  %v507_v47 = vpop.f32.mrb[11].mxu1  ;;  %v939_v48 = vpack.c.bf16 %v622_v43, %v622_v43  ;;  %v604_v49 = vsel %vm540_vm15, %v428_v26, %v572_v41  ;;  %v441_v51 = vadd.f32 %v1157_v24, %v440_v34 }
 0x110   : > { %v620_v50 = vsel %vm556_vm1, %v492_v27, %v588_v42  ;;  %v921_v52 = vpack.c.bf16 %v604_v49, %v604_v49  ;;  %vm561_vm3 = vcmp.gt.f32.partialorder %v513_v45, 0.0  ;;  %v593_v56 = vmul.f32 0.2, %v513_v45 }
 0x111   : > { %v937_v53 = vpack.c.bf16 %v620_v50, %v620_v50  ;;  %v609_v54 = vsel %vm545_vm2, %v449_v33, %v577_v44  ;;  %783 = vst.msk [vmem:[%s1168_s13 + $0x5c] sm:$0xf] %vm759_vm0, %v939_v48  ;;  %vm543_vm4 = vcmp.gt.f32.partialorder %v441_v51, 0.0  ;;  %v575_v57 = vmul.f32 0.2, %v441_v51  ;;  %v1002_v58 = vpop.f32.mrb[12].mxu0 }
 0x112   : > { %v926_v55 = vpack.c.bf16 %v609_v54, %v609_v54  ;;  %765 = vst.msk [vmem:[%s1168_s13 + $0x14] sm:$0xf] %vm759_vm0, %v921_v52  ;;  %v505_v59 = vadd.f32 %v1157_v24, %v504_v35  ;;  %v452_v60 = vadd.f32 %v999_v39, %v1157_v24  ;;  %v516_v61 = vadd.f32 %v1015_v40, %v1157_v24  ;;  %v1018_v63 = vpop.f32.mrb[12].mxu1  ;;  %v456_v0 = vpop.f32.mrb[13].mxu0 }
 0x113   : > { %781 = vst.msk [vmem:[%s1168_s13 + $0x54] sm:$0xf] %vm759_vm0, %v937_v53  ;;  %v444_v62 = vadd.f32 %v1157_v24, %v443_v46  ;;  %v625_v1 = vsel %vm561_vm3, %v513_v45, %v593_v56  ;;  %v607_v2 = vsel %vm543_vm4, %v441_v51, %v575_v57  ;;  %v508_v3 = vadd.f32 %v1157_v24, %v507_v47  ;;  %v520_v5 = vpop.f32.mrb[13].mxu1  ;;  %v1003_v6 = vpop.f32.mrb[14].mxu0 }
 0x114   : > { %770 = vst.msk [vmem:[%s1168_s13 + $0x28] sm:$0xf] %vm759_vm0, %v926_v55  ;;  %v465_v4 = vadd.f32 %v1002_v58, %v1157_v24  ;;  %v942_v7 = vpack.c.bf16 %v625_v1, %v625_v1  ;;  %v924_v8 = vpack.c.bf16 %v607_v2, %v607_v2  ;;  %vm559_vm5 = vcmp.gt.f32.partialorder %v505_v59, 0.0  ;;  %v1019_v10 = vpop.f32.mrb[14].mxu1  ;;  %v459_v11 = vpop.f32.mrb[15].mxu0 }
 0x115   : > { %v591_v9 = vmul.f32 0.2, %v505_v59  ;;  %vm546_vm6 = vcmp.gt.f32.partialorder %v452_v60, 0.0  ;;  %v578_v12 = vmul.f32 0.2, %v452_v60  ;;  %vm562_vm7 = vcmp.gt.f32.partialorder %v516_v61, 0.0 }
 0x116   : > { %v594_v13 = vmul.f32 0.2, %v516_v61  ;;  %786 = vst.msk [vmem:[%s1168_s13 + $0x68] sm:$0xf] %vm759_vm0, %v942_v7  ;;  %768 = vst.msk [vmem:[%s1168_s13 + $0x20] sm:$0xf] %vm759_vm0, %v924_v8  ;;  %v529_v28 = vadd.f32 %v1018_v63, %v1157_v24  ;;  %v457_v30 = vadd.f32 %v1157_v24, %v456_v0  ;;  %v521_v31 = vadd.f32 %v1157_v24, %v520_v5 }
 0x117   : > { %v623_v14 = vsel %vm559_vm5, %v505_v59, %v591_v9  ;;  %vm544_vm8 = vcmp.gt.f32.partialorder %v444_v62, 0.0  ;;  %v576_v15 = vmul.f32 0.2, %v444_v62  ;;  %vm560_vm9 = vcmp.gt.f32.partialorder %v508_v3, 0.0  ;;  %v523_v16 = vpop.f32.mrb[15].mxu1 }
 0x118   : > { %v940_v17 = vpack.c.bf16 %v623_v14, %v623_v14  ;;  %v610_v18 = vsel %vm546_vm6, %v452_v60, %v578_v12  ;;  %v626_v19 = vsel %vm562_vm7, %v516_v61, %v594_v13  ;;  %v592_v20 = vmul.f32 0.2, %v508_v3 }
 0x119   : > { %v927_v21 = vpack.c.bf16 %v610_v18, %v610_v18  ;;  %v943_v22 = vpack.c.bf16 %v626_v19, %v626_v19  ;;  %v608_v23 = vsel %vm544_vm8, %v444_v62, %v576_v15  ;;  %vm549_vm10 = vcmp.gt.f32.partialorder %v465_v4, 0.0 }
 0x11a   : > { %784 = vst.msk [vmem:[%s1168_s13 + $0x60] sm:$0xf] %vm759_vm0, %v940_v17  ;;  %v925_v25 = vpack.c.bf16 %v608_v23, %v608_v23  ;;  %v624_v26 = vsel %vm560_vm9, %v508_v3, %v592_v20  ;;  %v581_v27 = vmul.f32 0.2, %v465_v4  ;;  %v468_v32 = vadd.f32 %v1003_v6, %v1157_v24 }
 0x11b   : > { %771 = vst.msk [vmem:[%s1168_s13 + $0x2c] sm:$0xf] %vm759_vm0, %v927_v21  ;;  %787 = vst.msk [vmem:[%s1168_s13 + $0x6c] sm:$0xf] %vm759_vm0, %v943_v22  ;;  %v941_v29 = vpack.c.bf16 %v624_v26, %v624_v26  ;;  %vm565_vm11 = vcmp.gt.f32.partialorder %v529_v28, 0.0  ;;  %v532_v35 = vadd.f32 %v1019_v10, %v1157_v24  ;;  %vm547_vm12 = vcmp.gt.f32.partialorder %v457_v30, 0.0 }
 0x11c   : > { %769 = vst.msk [vmem:[%s1168_s13 + $0x24] sm:$0xf] %vm759_vm0, %v925_v25  ;;  %v613_v33 = vsel %vm549_vm10, %v465_v4, %v581_v27  ;;  %v597_v34 = vmul.f32 0.2, %v529_v28  ;;  %v579_v37 = vmul.f32 0.2, %v457_v30  ;;  %v460_v47 = vadd.f32 %v1157_v24, %v459_v11 }
 0x11d   : > { %785 = vst.msk [vmem:[%s1168_s13 + $0x64] sm:$0xf] %vm759_vm0, %v941_v29  ;;  %v930_v36 = vpack.c.bf16 %v613_v33, %v613_v33  ;;  %vm563_vm13 = vcmp.gt.f32.partialorder %v521_v31, 0.0  ;;  %v595_v39 = vmul.f32 0.2, %v521_v31  ;;  %vm550_vm14 = vcmp.gt.f32.partialorder %v468_v32, 0.0 }
 0x11e   : > { %v629_v38 = vsel %vm565_vm11, %v529_v28, %v597_v34  ;;  %v582_v40 = vmul.f32 0.2, %v468_v32  ;;  %v611_v42 = vsel %vm547_vm12, %v457_v30, %v579_v37  ;;  %vm566_vm15 = vcmp.gt.f32.partialorder %v532_v35, 0.0 }
 0x11f   : > { %774 = vst.msk [vmem:[%s1168_s13 + $0x38] sm:$0xf] %vm759_vm0, %v930_v36  ;;  %v946_v41 = vpack.c.bf16 %v629_v38, %v629_v38  ;;  %v598_v43 = vmul.f32 0.2, %v532_v35  ;;  %v928_v44 = vpack.c.bf16 %v611_v42, %v611_v42  ;;  %v627_v45 = vsel %vm563_vm13, %v521_v31, %v595_v39 }
 0x120   : > { %v614_v46 = vsel %vm550_vm14, %v468_v32, %v582_v40  ;;  %v944_v48 = vpack.c.bf16 %v627_v45, %v627_v45  ;;  %v524_v51 = vadd.f32 %v1157_v24, %v523_v16  ;;  %vm548_vm1 = vcmp.gt.f32.partialorder %v460_v47, 0.0 }
 0x121   : > { %790 = vst.msk [vmem:[%s1168_s13 + $0x78] sm:$0xf] %vm759_vm0, %v946_v41  ;;  %v931_v49 = vpack.c.bf16 %v614_v46, %v614_v46  ;;  %v630_v50 = vsel %vm566_vm15, %v532_v35, %v598_v43  ;;  %772 = vst.msk [vmem:[%s1168_s13 + $0x30] sm:$0xf] %vm759_vm0, %v928_v44  ;;  %v580_v53 = vmul.f32 0.2, %v460_v47 }
 0x122   : > { %v947_v52 = vpack.c.bf16 %v630_v50, %v630_v50  ;;  %788 = vst.msk [vmem:[%s1168_s13 + $0x70] sm:$0xf] %vm759_vm0, %v944_v48  ;;  %vm564_vm2 = vcmp.gt.f32.partialorder %v524_v51, 0.0  ;;  %v596_v54 = vmul.f32 0.2, %v524_v51 }
 0x123   : > { %775 = vst.msk [vmem:[%s1168_s13 + $0x3c] sm:$0xf] %vm759_vm0, %v931_v49  ;;  %v612_v55 = vsel %vm548_vm1, %v460_v47, %v580_v53 }
 0x124   : > { %791 = vst.msk [vmem:[%s1168_s13 + $0x7c] sm:$0xf] %vm759_vm0, %v947_v52  ;;  %v929_v56 = vpack.c.bf16 %v612_v55, %v612_v55  ;;  %v628_v57 = vsel %vm564_vm2, %v524_v51, %v596_v54 }
 0x125   : > { %v945_v58 = vpack.c.bf16 %v628_v57, %v628_v57 }
 0x126   : > { %773 = vst.msk [vmem:[%s1168_s13 + $0x34] sm:$0xf] %vm759_vm0, %v929_v56 }
 0x127   : > { %789 = vst.msk [vmem:[%s1168_s13 + $0x74] sm:$0xf] %vm759_vm0, %v945_v58 }
 0x128 PF: > { %s13_s12 = sadd.s32 1, %s1074_s12  }
 0x129   : > { %p10_p4 = scmp.ge.s32.totalorder %s13_s12, 4  }
 0x12b   :  { %12 = sbr.rel (!%p10_p4) target bundleno = 1 (0x1), region = 62 }

// kernel: _lambda_.6
= control target key start
LH: loop header
LB: loop body
LE: loop exit
PB: predicated region body
PF: predicated region fallthrough
CT: control target
= control target key end

     0   :  { %vm243_vm0 = vcmask 130048   ;;  %s940_s1 = inlined_call_operand.vmem [shape: bf16[128,16], index: 1, kind: input, shape index: {}]   ;;  %s941_s0 = inlined_call_operand.vmem [shape: bf16[128,128], index: 0, kind: input, shape index: {}]   ;;  %s942_s2 = inlined_call_operand.vmem [shape: f32[1,16], index: 2, kind: input, shape index: {}]   ;;  %s943_s3 = inlined_call_operand.vmem [shape: f32[1,16], index: 3, kind: input, shape index: {}]   ;;  %s944_s4 = inlined_call_operand.vmem [shape: bf16[128,16], index: 4, kind: output, shape index: {}]  }
   0x1   :  { %v647_v0 = vld [vmem:[%s940_s1] sm:$0xff]   ;;  %v648_v1 = vld [vmem:[%s940_s1 + $0x8] sm:$0xff]   ;;  %v649_v2 = vld [vmem:[%s940_s1 + $0x10] sm:$0xff]  }
   0x2   :  { %599 = vmatprep.subr.bf16.mxu0 %v647_v0  ;;  %631 = vmatprep.subr.bf16.mxu1 %v647_v0  ;;  %v650_v3 = vld [vmem:[%s940_s1 + $0x18] sm:$0xff]   ;;  %v655_v4 = vld [vmem:[%s941_s0] sm:$0xff]   ;;  %v652_v7 = vld [vmem:[%s940_s1 + $0x28] sm:$0xff]  }
   0x3   :  { %600 = vmatpush3.bf16.msra.mxu0 %v647_v0  ;;  %639 = vmatpush3.bf16.msra.mxu1 %v647_v0  ;;  %v651_v5 = vld [vmem:[%s940_s1 + $0x20] sm:$0xff]   ;;  %v653_v8 = vld [vmem:[%s940_s1 + $0x30] sm:$0xff]   ;;  %v654_v9 = vld [vmem:[%s940_s1 + $0x38] sm:$0xff]  }
   0x4   :  { %601 = vmatprep.subr.bf16.mxu0 %v648_v1  ;;  %632 = vmatprep.subr.bf16.mxu1 %v648_v1  ;;  %v659_v6 = vld [vmem:[%s941_s0 + $0x20] sm:$0xff]   ;;  %v656_v10 = vld [vmem:[%s941_s0 + $0x8] sm:$0xff]   ;;  %v657_v12 = vld [vmem:[%s941_s0 + $0x10] sm:$0xff]  }
   0x5   :  { %615 = vmatprep.mubr.bf16.mxu0 %v655_v4  ;;  %623 = vmatprep.mubr.bf16.mxu1 %v659_v6  ;;  %v660_v11 = vld [vmem:[%s941_s0 + $0x28] sm:$0xff]   ;;  %v661_v13 = vld [vmem:[%s941_s0 + $0x30] sm:$0xff]   ;;  %v658_v14 = vld [vmem:[%s941_s0 + $0x18] sm:$0xff]  }
   0x6   :  { %v662_v15 = vld [vmem:[%s941_s0 + $0x38] sm:$0xff]  }
   0x7   :  { %602 = vmatpush3.bf16.msra.mxu0 %v648_v1  ;;  %640 = vmatpush3.bf16.msra.mxu1 %v648_v1 }
   0x8   :  { %603 = vmatprep.subr.bf16.mxu0 %v649_v2  ;;  %633 = vmatprep.subr.bf16.mxu1 %v649_v2 }
   0xb   :  { %604 = vmatpush3.bf16.msra.mxu0 %v649_v2  ;;  %641 = vmatpush3.bf16.msra.mxu1 %v649_v2 }
   0xc   :  { %605 = vmatprep.subr.bf16.mxu0 %v650_v3  ;;  %634 = vmatprep.subr.bf16.mxu1 %v650_v3 }
   0xf   :  { %606 = vmatpush3.bf16.msra.mxu0 %v650_v3  ;;  %642 = vmatpush3.bf16.msra.mxu1 %v650_v3 }
  0x10   :  { %607 = vmatprep.subr.bf16.mxu0 %v651_v5  ;;  %635 = vmatprep.subr.bf16.mxu1 %v651_v5 }
  0x13   :  { %608 = vmatpush3.bf16.msra.mxu0 %v651_v5  ;;  %643 = vmatpush3.bf16.msra.mxu1 %v651_v5 }
  0x14   :  { %609 = vmatprep.subr.bf16.mxu0 %v652_v7  ;;  %636 = vmatprep.subr.bf16.mxu1 %v652_v7 }
  0x17   :  { %610 = vmatpush3.bf16.msra.mxu0 %v652_v7  ;;  %644 = vmatpush3.bf16.msra.mxu1 %v652_v7 }
  0x18   :  { %611 = vmatprep.subr.bf16.mxu0 %v653_v8  ;;  %637 = vmatprep.subr.bf16.mxu1 %v653_v8 }
  0x1b   :  { %612 = vmatpush3.bf16.msra.mxu0 %v653_v8  ;;  %645 = vmatpush3.bf16.msra.mxu1 %v653_v8 }
  0x1c   :  { %613 = vmatprep.subr.bf16.mxu0 %v654_v9  ;;  %638 = vmatprep.subr.bf16.mxu1 %v654_v9 }
  0x1f   :  { %614 = vmatpush3.bf16.msra.mxu0 %v654_v9  ;;  %646 = vmatpush3.bf16.msra.mxu1 %v654_v9 }
  0x22   :  { %616 = vmatmul.mubr.bf16.vlgmr.msra.gmra.mrb[0].mxu0 %v656_v10  ;;  %624 = vmatmul.mubr.bf16.vlgmr.msra.gmra.mrb[0].mxu1 %v660_v11 }
  0x23   :  { %619 = vmatprep.mubr.bf16.mxu0 %v657_v12  ;;  %627 = vmatprep.mubr.bf16.mxu1 %v661_v13 }
  0x2a   :  { %620 = vmatmul.mubr.bf16.gmra.mrb[4].mxu0 %v658_v14  ;;  %628 = vmatmul.mubr.bf16.gmra.mrb[4].mxu1 %v662_v15 }
  0xf5   :  { %v617_v16 = vpop.f32.mrb[0].mxu0  ;;  %v738_v17 = vpop.f32.mrb[0].mxu1 }
  0xf6   :  { %v180_v18 = vpop.f32.mrb[1].mxu0  ;;  %v212_v19 = vpop.f32.mrb[1].mxu1  ;;  %v247_v27 = vsel %vm243_vm0, %v617_v16, 0.0  ;;  %v263_v51 = vsel %vm243_vm0, %v738_v17, 0.0 }
  0xf7   :  { %v618_v20 = vpop.f32.mrb[2].mxu0  ;;  %v626_v21 = vpop.f32.mrb[2].mxu1  ;;  %v244_v24 = vsel %vm243_vm0, %v180_v18, 0.0  ;;  %v259_v46 = vsel %vm243_vm0, %v212_v19, 0.0 }
  0xf8   :  { %v183_v22 = vpop.f32.mrb[3].mxu0  ;;  %v215_v23 = vpop.f32.mrb[3].mxu1  ;;  %v249_v29 = vsel %vm243_vm0, %v618_v20, 0.0  ;;  %v265_v53 = vsel %vm243_vm0, %v626_v21, 0.0 }
  0xf9   :  { %v245_v25 = vsel %vm243_vm0, %v183_v22, 0.0  ;;  %v261_v49 = vsel %vm243_vm0, %v215_v23, 0.0 }
  0xfa   :  { %v246_v26 = vadd.f32 %v245_v25, %v244_v24 }
  0xfc   :  { %v248_v28 = vadd.f32 %v247_v27, %v246_v26 }
  0xfd   :  { %v621_v30 = vpop.f32.mrb[4].mxu0  ;;  %v629_v31 = vpop.f32.mrb[4].mxu1 }
  0xfe   :  { %v196_v32 = vpop.f32.mrb[5].mxu0  ;;  %v250_v33 = vadd.f32 %v249_v29, %v248_v28  ;;  %v228_v34 = vpop.f32.mrb[5].mxu1  ;;  %v255_v43 = vsel %vm243_vm0, %v621_v30, 0.0  ;;  %v271_v59 = vsel %vm243_vm0, %v629_v31, 0.0 }
  0xff   :  { %v251_v35 = vsel %vm243_vm0, %v196_v32, 0.0  ;;  %v622_v36 = vpop.f32.mrb[6].mxu0  ;;  %v630_v37 = vpop.f32.mrb[6].mxu1  ;;  %v267_v54 = vsel %vm243_vm0, %v228_v34, 0.0 }
 0x100   :  { %v252_v38 = vadd.f32 %v251_v35, %v250_v33  ;;  %v199_v39 = vpop.f32.mrb[7].mxu0  ;;  %v231_v40 = vpop.f32.mrb[7].mxu1  ;;  %v257_v45 = vsel %vm243_vm0, %v622_v36, 0.0  ;;  %v273_v61 = vsel %vm243_vm0, %v630_v37, 0.0 }
 0x101   :  { %v253_v41 = vsel %vm243_vm0, %v199_v39, 0.0  ;;  %v269_v57 = vsel %vm243_vm0, %v231_v40, 0.0 }
 0x102   :  { %v254_v42 = vadd.f32 %v253_v41, %v252_v38 }
 0x104   :  { %v256_v44 = vadd.f32 %v255_v43, %v254_v42 }
 0x106   :  { %v258_v47 = vadd.f32 %v257_v45, %v256_v44 }
 0x108   :  { %v260_v48 = vadd.f32 %v259_v46, %v258_v47 }
 0x10a   :  { %v262_v50 = vadd.f32 %v261_v49, %v260_v48 }
 0x10c   :  { %v264_v52 = vadd.f32 %v263_v51, %v262_v50 }
 0x10e   :  { %v266_v55 = vadd.f32 %v265_v53, %v264_v52 }
 0x110   :  { %v268_v56 = vadd.f32 %v267_v54, %v266_v55 }
 0x112   :  { %v270_v58 = vadd.f32 %v269_v57, %v268_v56 }
 0x114   :  { %v272_v60 = vadd.f32 %v271_v59, %v270_v58 }
 0x116   :  { %v274_v62 = vadd.f32 %v273_v61, %v272_v60 }
 0x118   :  { %v275_v63 = vrot.slane %v274_v62, 4 }
 0x11a   :  { %v276_v0 = vadd.f32 %v275_v63, %v274_v62 }
 0x11c   :  { %v277_v1 = vrot.slane %v276_v0, 2 }
 0x11e   :  { %v278_v2 = vadd.f32 %v277_v1, %v276_v0 }
 0x120   :  { %v279_v3 = vrot.slane %v278_v2, 1 }
 0x122   :  { %v280_v4 = vadd.f32 %v279_v3, %v278_v2 }
 0x124   :  { %v281_v5 = vmul.f32 0.0078125, %v280_v4 }
 0x126   :  { %v757_v6 = vsub.f32 %v180_v18, %v281_v5  ;;  %v759_v7 = vsub.f32 %v183_v22, %v281_v5  ;;  %v761_v8 = vsub.f32 %v617_v16, %v281_v5  ;;  %v763_v9 = vsub.f32 %v618_v20, %v281_v5 }
 0x127   :  { %v765_v10 = vsub.f32 %v196_v32, %v281_v5  ;;  %v767_v11 = vsub.f32 %v199_v39, %v281_v5  ;;  %v769_v12 = vsub.f32 %v621_v30, %v281_v5  ;;  %v771_v13 = vsub.f32 %v622_v36, %v281_v5 }
 0x128   :  { %v773_v14 = vsub.f32 %v212_v19, %v281_v5  ;;  %v775_v15 = vsub.f32 %v215_v23, %v281_v5  ;;  %v778_v18 = vsub.f32 %v738_v17, %v281_v5  ;;  %v780_v22 = vsub.f32 %v626_v21, %v281_v5 }
 0x129   :  { %v782_v16 = vsub.f32 %v228_v34, %v281_v5  ;;  %v784_v20 = vsub.f32 %v231_v40, %v281_v5  ;;  %v786_v24 = vsub.f32 %v629_v31, %v281_v5  ;;  %v788_v25 = vsub.f32 %v630_v37, %v281_v5 }
 0x12a   :  { %v298_v26 = vmul.f32 %v757_v6, %v757_v6  ;;  %v299_v19 = vmul.f32 %v759_v7, %v759_v7  ;;  %v300_v17 = vmul.f32 %v761_v8, %v761_v8  ;;  %v307_v21 = vmul.f32 %v775_v15, %v775_v15 }
 0x12b   :  { %v308_v23 = vmul.f32 %v778_v18, %v778_v18  ;;  %v301_v27 = vmul.f32 %v763_v9, %v763_v9  ;;  %v309_v28 = vmul.f32 %v780_v22, %v780_v22  ;;  %v310_v29 = vmul.f32 %v782_v16, %v782_v16 }
 0x12c   :  { %v311_v30 = vmul.f32 %v784_v20, %v784_v20  ;;  %v312_v31 = vmul.f32 %v786_v24, %v786_v24  ;;  %v313_v32 = vmul.f32 %v788_v25, %v788_v25  ;;  %v314_v33 = vsel %vm243_vm0, %v298_v26, 0.0 }
 0x12d   :  { %v315_v34 = vsel %vm243_vm0, %v299_v19, 0.0  ;;  %v302_v36 = vmul.f32 %v765_v10, %v765_v10  ;;  %v317_v37 = vsel %vm243_vm0, %v300_v17, 0.0  ;;  %v331_v38 = vsel %vm243_vm0, %v307_v21, 0.0 }
 0x12e   :  { %v316_v35 = vadd.f32 %v315_v34, %v314_v33  ;;  %v333_v39 = vsel %vm243_vm0, %v308_v23, 0.0  ;;  %v335_v41 = vsel %vm243_vm0, %v309_v28, 0.0  ;;  %v337_v42 = vsel %vm243_vm0, %v310_v29, 0.0 }
 0x12f   :  { %v339_v43 = vsel %vm243_vm0, %v311_v30, 0.0  ;;  %v303_v44 = vmul.f32 %v767_v11, %v767_v11  ;;  %v319_v45 = vsel %vm243_vm0, %v301_v27, 0.0  ;;  %v341_v46 = vsel %vm243_vm0, %v312_v31, 0.0  ;;  %v352_v31 = vld [vmem:[%s942_s2] sm:$0x1] }
 0x130   :  { %v318_v40 = vadd.f32 %v317_v37, %v316_v35  ;;  %v343_v47 = vsel %vm243_vm0, %v313_v32, 0.0  ;;  %v304_v49 = vmul.f32 %v769_v12, %v769_v12  ;;  %v321_v50 = vsel %vm243_vm0, %v302_v36, 0.0 }
 0x131   :  { %v305_v52 = vmul.f32 %v771_v13, %v771_v13  ;;  %v323_v53 = vsel %vm243_vm0, %v303_v44, 0.0  ;;  %v306_v55 = vmul.f32 %v773_v14, %v773_v14  ;;  %v357_v29 = vlaneseq  ;;  %v550_v44 = vld [vmem:[%s943_s3] ss:$0 sm:$0xff] }
 0x132   :  { %v320_v48 = vadd.f32 %v319_v45, %v318_v40  ;;  %v325_v56 = vsel %vm243_vm0, %v304_v49, 0.0 }
 0x133   :  { %v327_v58 = vsel %vm243_vm0, %v305_v52, 0.0  ;;  %v329_v60 = vsel %vm243_vm0, %v306_v55, 0.0  ;;  %v358_v30 = vshrl.u32 %v357_v29, 7 }
 0x134   :  { %v322_v51 = vadd.f32 %v321_v50, %v320_v48 }
 0x135   :  { %v359_v32 = vsub.s32 0, %v358_v30 }
 0x136   :  { %v324_v54 = vadd.f32 %v323_v53, %v322_v51 }
 0x138   :  { %v326_v57 = vadd.f32 %v325_v56, %v324_v54 }
 0x13a   :  { %v328_v59 = vadd.f32 %v327_v58, %v326_v57 }
 0x13c   :  { %v330_v61 = vadd.f32 %v329_v60, %v328_v59 }
 0x13e   :  { %v332_v62 = vadd.f32 %v331_v38, %v330_v61 }
 0x140   :  { %v334_v63 = vadd.f32 %v333_v39, %v332_v62 }
 0x142   :  { %v336_v0 = vadd.f32 %v335_v41, %v334_v63 }
 0x144   :  { %v338_v1 = vadd.f32 %v337_v42, %v336_v0 }
 0x146   :  { %v340_v2 = vadd.f32 %v339_v43, %v338_v1 }
 0x148   :  { %v342_v3 = vadd.f32 %v341_v46, %v340_v2 }
 0x14a   :  { %v344_v4 = vadd.f32 %v343_v47, %v342_v3 }
 0x14c   :  { %v345_v5 = vrot.slane %v344_v4, 4 }
 0x14e   :  { %v346_v26 = vadd.f32 %v345_v5, %v344_v4 }
 0x150   :  { %v347_v19 = vrot.slane %v346_v26, 2 }
 0x152   :  { %v348_v17 = vadd.f32 %v347_v19, %v346_v26 }
 0x154   :  { %v349_v21 = vrot.slane %v348_v17, 1 }
 0x156   :  { %v350_v23 = vadd.f32 %v349_v21, %v348_v17 }
 0x158   :  { %v351_v27 = vmul.f32 0.0078125, %v350_v23 }
 0x15a   :  { %v353_v28 = vadd.f32 1e-05, %v351_v27 }
 0x15c   :  { %663 = vrsqrt.f32 %v353_v28 }
 0x166   :  { %v664_v33 = vpop.eup %663 }
 0x167   :  { %v355_v34 = vmul.f32 %v664_v33, %v352_v31 }
 0x169   :  { %v360_v35 = vrot.slane %v355_v34, %v359_v32 }
 0x16b   :  { %v362_v36 = vmul.f32 %v360_v35, %v757_v6  ;;  %v363_v37 = vmul.f32 %v360_v35, %v759_v7  ;;  %v364_v38 = vmul.f32 %v360_v35, %v761_v8  ;;  %v365_v39 = vmul.f32 %v360_v35, %v763_v9 }
 0x16c   :  { %v366_v40 = vmul.f32 %v360_v35, %v765_v10  ;;  %v367_v41 = vmul.f32 %v360_v35, %v767_v11  ;;  %v368_v42 = vmul.f32 %v360_v35, %v769_v12  ;;  %v369_v43 = vmul.f32 %v360_v35, %v771_v13 }
 0x16d   :  { %v370_v6 = vmul.f32 %v360_v35, %v773_v14  ;;  %v371_v7 = vmul.f32 %v360_v35, %v775_v15  ;;  %v372_v8 = vmul.f32 %v360_v35, %v778_v18  ;;  %v373_v9 = vmul.f32 %v360_v35, %v780_v22 }
 0x16e   :  { %v374_v10 = vmul.f32 %v360_v35, %v782_v16  ;;  %v375_v11 = vmul.f32 %v360_v35, %v784_v20  ;;  %v376_v12 = vmul.f32 %v360_v35, %v786_v24  ;;  %v377_v13 = vmul.f32 %v360_v35, %v788_v25 }
 0x16f   :  { %v385_v45 = vadd.f32 %v550_v44, %v362_v36  ;;  %v386_v46 = vadd.f32 %v550_v44, %v363_v37  ;;  %v387_v47 = vadd.f32 %v550_v44, %v364_v38  ;;  %v388_v48 = vadd.f32 %v550_v44, %v365_v39 }
 0x170   :  { %v389_v49 = vadd.f32 %v550_v44, %v366_v40  ;;  %v390_v14 = vadd.f32 %v550_v44, %v367_v41  ;;  %v391_v50 = vadd.f32 %v550_v44, %v368_v42  ;;  %v392_v15 = vadd.f32 %v550_v44, %v369_v43 }
 0x171   :  { %v393_v51 = vadd.f32 %v550_v44, %v370_v6  ;;  %v394_v18 = vadd.f32 %v550_v44, %v371_v7  ;;  %v395_v52 = vadd.f32 %v550_v44, %v372_v8  ;;  %v396_v22 = vadd.f32 %v550_v44, %v373_v9 }
 0x172   :  { %v397_v53 = vadd.f32 %v550_v44, %v374_v10  ;;  %v398_v16 = vadd.f32 %v550_v44, %v375_v11  ;;  %v399_v54 = vadd.f32 %v550_v44, %v376_v12  ;;  %v400_v20 = vadd.f32 %v550_v44, %v377_v13 }
 0x173   :  { %vm402_vm2 = vcmp.gt.f32.partialorder %v386_v46, 0.0  ;;  %vm403_vm3 = vcmp.gt.f32.partialorder %v387_v47, 0.0  ;;  %vm404_vm4 = vcmp.gt.f32.partialorder %v388_v48, 0.0  ;;  %vm405_vm5 = vcmp.gt.f32.partialorder %v389_v49, 0.0 }
 0x174   :  { %vm406_vm6 = vcmp.gt.f32.partialorder %v390_v14, 0.0  ;;  %vm408_vm8 = vcmp.gt.f32.partialorder %v392_v15, 0.0  ;;  %vm409_vm9 = vcmp.gt.f32.partialorder %v393_v51, 0.0  ;;  %vm410_vm10 = vcmp.gt.f32.partialorder %v394_v18, 0.0 }
 0x175   :  { %vm411_vm11 = vcmp.gt.f32.partialorder %v395_v52, 0.0  ;;  %vm412_vm12 = vcmp.gt.f32.partialorder %v396_v22, 0.0  ;;  %vm413_vm13 = vcmp.gt.f32.partialorder %v397_v53, 0.0  ;;  %vm414_vm14 = vcmp.gt.f32.partialorder %v398_v16, 0.0 }
 0x176   :  { %vm415_vm15 = vcmp.gt.f32.partialorder %v399_v54, 0.0  ;;  %vm416_vm0 = vcmp.gt.f32.partialorder %v400_v20, 0.0  ;;  %v417_v24 = vmul.f32 0.2, %v385_v45  ;;  %v418_v25 = vmul.f32 0.2, %v386_v46 }
 0x177   :  { %v419_v55 = vmul.f32 0.2, %v387_v47  ;;  %v420_v56 = vmul.f32 0.2, %v388_v48  ;;  %v421_v57 = vmul.f32 0.2, %v389_v49 }
 0x178   :  { %v422_v58 = vmul.f32 0.2, %v390_v14  ;;  %v423_v59 = vmul.f32 0.2, %v391_v50  ;;  %v424_v60 = vmul.f32 0.2, %v392_v15  ;;  %v434_v2 = vsel %vm402_vm2, %v386_v46, %v418_v25 }
 0x179   :  { %v425_v61 = vmul.f32 0.2, %v393_v51  ;;  %vm945_vm7 = vcmp.gt.f32.partialorder %v385_v45, 0.0  ;;  %v426_v63 = vmul.f32 0.2, %v394_v18  ;;  %v435_v26 = vsel %vm403_vm3, %v387_v47, %v419_v55 }
 0x17a   :  { %v433_v62 = vsel %vm945_vm7, %v385_v45, %v417_v24  ;;  %v427_v0 = vmul.f32 0.2, %v395_v52  ;;  %v428_v1 = vmul.f32 0.2, %v396_v22  ;;  %v429_v3 = vmul.f32 0.2, %v397_v53 }
 0x17b   :  { %v430_v4 = vmul.f32 0.2, %v398_v16  ;;  %v431_v5 = vmul.f32 0.2, %v399_v54  ;;  %v432_v19 = vmul.f32 0.2, %v400_v20  ;;  %v436_v17 = vsel %vm404_vm4, %v388_v48, %v420_v56 }
 0x17c   :  { %v437_v21 = vsel %vm405_vm5, %v389_v49, %v421_v57  ;;  %v438_v23 = vsel %vm406_vm6, %v390_v14, %v422_v58  ;;  %vm946_vm1 = vcmp.gt.f32.partialorder %v391_v50, 0.0  ;;  %v440_v28 = vsel %vm408_vm8, %v392_v15, %v424_v60 }
 0x17d   :  { %v439_v27 = vsel %vm946_vm1, %v391_v50, %v423_v59  ;;  %v441_v29 = vsel %vm409_vm9, %v393_v51, %v425_v61  ;;  %v442_v30 = vsel %vm410_vm10, %v394_v18, %v426_v63  ;;  %v443_v31 = vsel %vm411_vm11, %v395_v52, %v427_v0 }
 0x17e   :  { %v444_v32 = vsel %vm412_vm12, %v396_v22, %v428_v1  ;;  %v445_v33 = vsel %vm413_vm13, %v397_v53, %v429_v3  ;;  %v446_v34 = vsel %vm414_vm14, %v398_v16, %v430_v4  ;;  %v447_v35 = vsel %vm415_vm15, %v399_v54, %v431_v5 }
 0x17f   :  { %v448_v36 = vsel %vm416_vm0, %v400_v20, %v432_v19  ;;  %v567_v37 = vpack.c.bf16 %v433_v62, %v433_v62  ;;  %v568_v38 = vpack.c.bf16 %v434_v2, %v434_v2  ;;  %v569_v39 = vpack.c.bf16 %v435_v26, %v435_v26 }
 0x180   :  { %v570_v40 = vpack.c.bf16 %v436_v17, %v436_v17  ;;  %v571_v41 = vpack.c.bf16 %v437_v21, %v437_v21  ;;  %v572_v42 = vpack.c.bf16 %v438_v23, %v438_v23  ;;  %v573_v43 = vpack.c.bf16 %v439_v27, %v439_v27 }
 0x181   :  { %v574_v44 = vpack.c.bf16 %v440_v28, %v440_v28  ;;  %v575_v6 = vpack.c.bf16 %v441_v29, %v441_v29  ;;  %v576_v7 = vpack.c.bf16 %v442_v30, %v442_v30  ;;  %vm947_vm1 = vcmask 125952  }
 0x182   :  { %514 = vst.msk [vmem:[%s944_s4] sm:$0xf] %vm947_vm1, %v567_v37  ;;  %vm948_vm2 = vmmov %vm947_vm1  ;;  %v577_v8 = vpack.c.bf16 %v443_v31, %v443_v31  ;;  %v578_v9 = vpack.c.bf16 %v444_v32, %v444_v32  ;;  %v579_v10 = vpack.c.bf16 %v445_v33, %v445_v33  ;;  %v580_v11 = vpack.c.bf16 %v446_v34, %v446_v34 }
 0x183   :  { %515 = vst.msk [vmem:[%s944_s4 + $0x4] sm:$0xf] %vm948_vm2, %v568_v38  ;;  %vm949_vm3 = vmmov %vm947_vm1  ;;  %v581_v12 = vpack.c.bf16 %v447_v35, %v447_v35  ;;  %v582_v13 = vpack.c.bf16 %v448_v36, %v448_v36 }
 0x184   :  { %516 = vst.msk [vmem:[%s944_s4 + $0x8] sm:$0xf] %vm949_vm3, %v569_v39  ;;  %vm950_vm4 = vmmov %vm947_vm1 }
 0x185   :  { %517 = vst.msk [vmem:[%s944_s4 + $0xc] sm:$0xf] %vm950_vm4, %v570_v40  ;;  %vm951_vm5 = vmmov %vm947_vm1 }
 0x186   :  { %518 = vst.msk [vmem:[%s944_s4 + $0x10] sm:$0xf] %vm951_vm5, %v571_v41  ;;  %vm952_vm6 = vmmov %vm947_vm1 }
 0x187   :  { %519 = vst.msk [vmem:[%s944_s4 + $0x14] sm:$0xf] %vm952_vm6, %v572_v42  ;;  %vm953_vm7 = vmmov %vm947_vm1 }
 0x188   :  { %520 = vst.msk [vmem:[%s944_s4 + $0x18] sm:$0xf] %vm953_vm7, %v573_v43  ;;  %vm954_vm8 = vmmov %vm947_vm1 }
 0x189   :  { %521 = vst.msk [vmem:[%s944_s4 + $0x1c] sm:$0xf] %vm954_vm8, %v574_v44  ;;  %vm955_vm9 = vmmov %vm947_vm1 }
 0x18a   :  { %522 = vst.msk [vmem:[%s944_s4 + $0x20] sm:$0xf] %vm955_vm9, %v575_v6  ;;  %vm956_vm10 = vmmov %vm947_vm1 }
 0x18b   :  { %523 = vst.msk [vmem:[%s944_s4 + $0x24] sm:$0xf] %vm956_vm10, %v576_v7  ;;  %vm957_vm11 = vmmov %vm947_vm1 }
 0x18c   :  { %524 = vst.msk [vmem:[%s944_s4 + $0x28] sm:$0xf] %vm957_vm11, %v577_v8  ;;  %vm958_vm12 = vmmov %vm947_vm1 }
 0x18d   :  { %525 = vst.msk [vmem:[%s944_s4 + $0x2c] sm:$0xf] %vm958_vm12, %v578_v9  ;;  %vm959_vm13 = vmmov %vm947_vm1 }
 0x18e   :  { %526 = vst.msk [vmem:[%s944_s4 + $0x30] sm:$0xf] %vm959_vm13, %v579_v10  ;;  %vm960_vm14 = vmmov %vm947_vm1 }
 0x18f   :  { %527 = vst.msk [vmem:[%s944_s4 + $0x34] sm:$0xf] %vm960_vm14, %v580_v11  ;;  %vm961_vm15 = vmmov %vm947_vm1 }
 0x190   :  { %528 = vst.msk [vmem:[%s944_s4 + $0x38] sm:$0xf] %vm961_vm15, %v581_v12  ;;  %vm962_vm0 = vmmov %vm947_vm1 }
 0x191   :  { %529 = vst.msk [vmem:[%s944_s4 + $0x3c] sm:$0xf] %vm962_vm0, %v582_v13 }

// kernel: _lambda_.7
= control target key start
LH: loop header
LB: loop body
LE: loop exit
PB: predicated region body
PF: predicated region fallthrough
CT: control target
= control target key end

     0   :  { %vm219_vm0 = vcmask 261120   ;;  %vm309_vm5 = vcmask 257024   ;;  %s526_s1 = inlined_call_operand.vmem [shape: bf16[256,32], index: 1, kind: input, shape index: {}]   ;;  %s527_s0 = inlined_call_operand.vmem [shape: bf16[32,256], index: 0, kind: input, shape index: {}]   ;;  %s528_s2 = inlined_call_operand.vmem [shape: f32[1,32], index: 2, kind: input, shape index: {}]   ;;  %s529_s3 = inlined_call_operand.vmem [shape: f32[1,32], index: 3, kind: input, shape index: {}]   ;;  %s530_s4 = inlined_call_operand.vmem [shape: bf16[32,32], index: 4, kind: output, shape index: {}]  }
   0x1   :  { %v391_v0 = vld [vmem:[%s526_s1 + $0x40] sm:$0xff]   ;;  %v393_v2 = vld [vmem:[%s526_s1 + $0x48] sm:$0xff]   ;;  %v395_v4 = vld [vmem:[%s526_s1 + $0x50] sm:$0xff]  }
   0x2   :  { %v392_v1 = vld [vmem:[%s526_s1] sm:$0xff]   ;;  %347 = vmatprep.subr.bf16.mxu0 %v391_v0  ;;  %375 = vmatprep.subr.bf16.mxu1 %v391_v0  ;;  %v394_v3 = vld [vmem:[%s526_s1 + $0x8] sm:$0xff]   ;;  %v396_v5 = vld [vmem:[%s526_s1 + $0x10] sm:$0xff]  }
   0x3   :  { %348 = vmatpush3.bf16.msra.mxu0 %v392_v1  ;;  %383 = vmatpush3.bf16.msra.mxu1 %v392_v1  ;;  %v397_v6 = vld [vmem:[%s526_s1 + $0x58] sm:$0xff]   ;;  %v399_v8 = vld [vmem:[%s526_s1 + $0x60] sm:$0xff]   ;;  %v401_v10 = vld [vmem:[%s526_s1 + $0x68] sm:$0xff]  }
   0x4   :  { %349 = vmatprep.subr.bf16.mxu0 %v393_v2  ;;  %376 = vmatprep.subr.bf16.mxu1 %v393_v2  ;;  %v398_v7 = vld [vmem:[%s526_s1 + $0x18] sm:$0xff]   ;;  %v400_v9 = vld [vmem:[%s526_s1 + $0x20] sm:$0xff]   ;;  %v402_v13 = vld [vmem:[%s526_s1 + $0x28] sm:$0xff]  }
   0x5   :  { %v409_v11 = vld [vmem:[%s527_s0 + $0x4] ss:$8 sps:$4 sm:$0xff]   ;;  %v412_v12 = vld [vmem:[%s527_s0 + $0x14] ss:$8 sps:$4 sm:$0xff]   ;;  %v407_v18 = vld [vmem:[%s527_s0] ss:$8 sps:$4 sm:$0xff]  }
   0x6   :  { %v403_v14 = vld [vmem:[%s526_s1 + $0x70] sm:$0xff]   ;;  %202 = vmatprep.mubr.bf16.mxu0 %v409_v11  ;;  %210 = vmatprep.mubr.bf16.mxu1 %v412_v12  ;;  %v405_v16 = vld [vmem:[%s526_s1 + $0x78] sm:$0xff]   ;;  %v338_v12 = vld [vmem:[%s529_s3] ss:$0 sm:$0xff] }
   0x7   :  { %350 = vmatpush3.bf16.msra.mxu0 %v394_v3  ;;  %384 = vmatpush3.bf16.msra.mxu1 %v394_v3  ;;  %v404_v15 = vld [vmem:[%s526_s1 + $0x30] sm:$0xff]   ;;  %v406_v17 = vld [vmem:[%s526_s1 + $0x38] sm:$0xff]  }
   0x8   :  { %351 = vmatprep.subr.bf16.mxu0 %v395_v4  ;;  %377 = vmatprep.subr.bf16.mxu1 %v395_v4  ;;  %v410_v19 = vld [vmem:[%s527_s0 + $0x10] ss:$8 sps:$4 sm:$0xff]  }
   0xb   :  { %352 = vmatpush3.bf16.msra.mxu0 %v396_v5  ;;  %385 = vmatpush3.bf16.msra.mxu1 %v396_v5  ;;  %v261_v5 = vlaneseq }
   0xc   :  { %353 = vmatprep.subr.bf16.mxu0 %v397_v6  ;;  %378 = vmatprep.subr.bf16.mxu1 %v397_v6 }
   0xd   :  { %v262_v6 = vshrl.u32 %v261_v5, 7 }
   0xf   :  { %354 = vmatpush3.bf16.msra.mxu0 %v398_v7  ;;  %386 = vmatpush3.bf16.msra.mxu1 %v398_v7  ;;  %v256_v7 = vld [vmem:[%s528_s2] sm:$0x1] }
  0x10   :  { %355 = vmatprep.subr.bf16.mxu0 %v399_v8  ;;  %379 = vmatprep.subr.bf16.mxu1 %v399_v8  ;;  %v263_v8 = vsub.s32 0, %v262_v6 }
  0x13   :  { %356 = vmatpush3.bf16.msra.mxu0 %v400_v9  ;;  %387 = vmatpush3.bf16.msra.mxu1 %v400_v9 }
  0x14   :  { %357 = vmatprep.subr.bf16.mxu0 %v401_v10  ;;  %380 = vmatprep.subr.bf16.mxu1 %v401_v10 }
  0x17   :  { %358 = vmatpush3.bf16.msra.mxu0 %v402_v13  ;;  %388 = vmatpush3.bf16.msra.mxu1 %v402_v13 }
  0x18   :  { %359 = vmatprep.subr.bf16.mxu0 %v403_v14  ;;  %381 = vmatprep.subr.bf16.mxu1 %v403_v14 }
  0x1b   :  { %360 = vmatpush3.bf16.msra.mxu0 %v404_v15  ;;  %389 = vmatpush3.bf16.msra.mxu1 %v404_v15 }
  0x1c   :  { %361 = vmatprep.subr.bf16.mxu0 %v405_v16  ;;  %382 = vmatprep.subr.bf16.mxu1 %v405_v16 }
  0x1f   :  { %362 = vmatpush3.bf16.msra.mxu0 %v406_v17  ;;  %390 = vmatpush3.bf16.msra.mxu1 %v406_v17 }
  0x22   :  { %203 = vmatmul.mubr.bf16.vlgmr.msra.gmra.mrb[0].mxu0 %v407_v18  ;;  %211 = vmatmul.mubr.bf16.vlgmr.msra.gmra.mrb[0].mxu1 %v410_v19 }
  0xf5   :  { %v363_v20 = vpop.f32.mrb[0].mxu0  ;;  %v369_v21 = vpop.f32.mrb[0].mxu1 }
  0xf6   :  { %v364_v22 = vpop.f32.mrb[1].mxu0  ;;  %v370_v23 = vpop.f32.mrb[1].mxu1 }
  0xf7   :  { %v365_v24 = vadd.f32 %v364_v22, %v363_v20  ;;  %v366_v25 = vpop.f32.mrb[2].mxu0  ;;  %v371_v26 = vadd.f32 %v370_v23, %v369_v21  ;;  %v372_v27 = vpop.f32.mrb[2].mxu1 }
  0xf8   :  { %v367_v28 = vpop.f32.mrb[3].mxu0  ;;  %v373_v29 = vpop.f32.mrb[3].mxu1 }
  0xf9   :  { %v368_v30 = vadd.f32 %v367_v28, %v366_v25  ;;  %v374_v31 = vadd.f32 %v373_v29, %v372_v27  ;;  %v220_v32 = vsel %vm219_vm0, %v365_v24, 0.0  ;;  %v223_v33 = vsel %vm219_vm0, %v371_v26, 0.0 }
  0xfb   :  { %v221_v34 = vsel %vm219_vm0, %v368_v30, 0.0  ;;  %v225_v37 = vsel %vm219_vm0, %v374_v31, 0.0 }
  0xfc   :  { %v222_v35 = vadd.f32 %v221_v34, %v220_v32 }
  0xfe   :  { %v224_v36 = vadd.f32 %v223_v33, %v222_v35 }
 0x100   :  { %v226_v38 = vadd.f32 %v225_v37, %v224_v36 }
 0x102   :  { %v227_v39 = vrot.slane %v226_v38, 4 }
 0x104   :  { %v228_v40 = vadd.f32 %v227_v39, %v226_v38 }
 0x106   :  { %v229_v41 = vrot.slane %v228_v40, 2 }
 0x108   :  { %v230_v42 = vadd.f32 %v229_v41, %v228_v40 }
 0x10a   :  { %v231_v43 = vrot.slane %v230_v42, 1 }
 0x10c   :  { %v232_v44 = vadd.f32 %v231_v43, %v230_v42 }
 0x10e   :  { %v233_v45 = vmul.f32 0.03125, %v232_v44 }
 0x110   :  { %v234_v46 = vsub.f32 %v365_v24, %v233_v45  ;;  %v235_v47 = vsub.f32 %v368_v30, %v233_v45  ;;  %v236_v48 = vsub.f32 %v371_v26, %v233_v45  ;;  %v237_v49 = vsub.f32 %v374_v31, %v233_v45 }
 0x112   :  { %v238_v50 = vmul.f32 %v234_v46, %v234_v46  ;;  %v239_v51 = vmul.f32 %v235_v47, %v235_v47  ;;  %v240_v52 = vmul.f32 %v236_v48, %v236_v48  ;;  %v241_v53 = vmul.f32 %v237_v49, %v237_v49 }
 0x114   :  { %v242_v54 = vsel %vm219_vm0, %v238_v50, 0.0  ;;  %v243_v55 = vsel %vm219_vm0, %v239_v51, 0.0  ;;  %v245_v57 = vsel %vm219_vm0, %v240_v52, 0.0  ;;  %v247_v59 = vsel %vm219_vm0, %v241_v53, 0.0 }
 0x115   :  { %v244_v56 = vadd.f32 %v243_v55, %v242_v54 }
 0x117   :  { %v246_v58 = vadd.f32 %v245_v57, %v244_v56 }
 0x119   :  { %v248_v60 = vadd.f32 %v247_v59, %v246_v58 }
 0x11b   :  { %v249_v61 = vrot.slane %v248_v60, 4 }
 0x11d   :  { %v250_v62 = vadd.f32 %v249_v61, %v248_v60 }
 0x11f   :  { %v251_v63 = vrot.slane %v250_v62, 2 }
 0x121   :  { %v252_v0 = vadd.f32 %v251_v63, %v250_v62 }
 0x123   :  { %v253_v1 = vrot.slane %v252_v0, 1 }
 0x125   :  { %v254_v2 = vadd.f32 %v253_v1, %v252_v0 }
 0x127   :  { %v255_v3 = vmul.f32 0.03125, %v254_v2 }
 0x129   :  { %v257_v4 = vadd.f32 1e-05, %v255_v3 }
 0x12b   :  { %413 = vrsqrt.f32 %v257_v4 }
 0x135   :  { %v414_v9 = vpop.eup %413 }
 0x136   :  { %v259_v10 = vmul.f32 %v414_v9, %v256_v7 }
 0x138   :  { %v264_v11 = vrot.slane %v259_v10, %v263_v8 }
 0x13a   :  { %v266_v13 = vmul.f32 %v264_v11, %v234_v46  ;;  %v267_v14 = vmul.f32 %v264_v11, %v235_v47  ;;  %v268_v15 = vmul.f32 %v264_v11, %v236_v48  ;;  %v269_v16 = vmul.f32 %v264_v11, %v237_v49 }
 0x13c   :  { %v277_v17 = vadd.f32 %v338_v12, %v266_v13  ;;  %v278_v18 = vadd.f32 %v338_v12, %v267_v14  ;;  %v279_v19 = vadd.f32 %v338_v12, %v268_v15  ;;  %v280_v20 = vadd.f32 %v338_v12, %v269_v16 }
 0x13e   :  { %vm281_vm1 = vcmp.gt.f32.partialorder %v277_v17, 0.0  ;;  %vm282_vm2 = vcmp.gt.f32.partialorder %v278_v18, 0.0  ;;  %vm283_vm3 = vcmp.gt.f32.partialorder %v279_v19, 0.0  ;;  %vm284_vm4 = vcmp.gt.f32.partialorder %v280_v20, 0.0 }
 0x13f   :  { %v285_v21 = vmul.f32 0.2, %v277_v17  ;;  %v286_v22 = vmul.f32 0.2, %v278_v18  ;;  %v287_v23 = vmul.f32 0.2, %v279_v19 }
 0x140   :  { %v288_v24 = vmul.f32 0.2, %v280_v20 }
 0x141   :  { %v289_v25 = vsel %vm281_vm1, %v277_v17, %v285_v21  ;;  %v290_v26 = vsel %vm282_vm2, %v278_v18, %v286_v22  ;;  %v291_v27 = vsel %vm283_vm3, %v279_v19, %v287_v23 }
 0x142   :  { %v292_v28 = vsel %vm284_vm4, %v280_v20, %v288_v24  ;;  %v343_v29 = vpack.c.bf16 %v289_v25, %v289_v25  ;;  %v344_v30 = vpack.c.bf16 %v290_v26, %v290_v26  ;;  %v345_v31 = vpack.c.bf16 %v291_v27, %v291_v27 }
 0x143   :  { %v346_v32 = vpack.c.bf16 %v292_v28, %v292_v28 }
 0x144   :  { %310 = vst.msk [vmem:[%s530_s4] sm:$0xf] %vm309_vm5, %v343_v29  ;;  %311 = vst.msk [vmem:[%s530_s4 + $0x4] sm:$0xf] %vm309_vm5, %v344_v30 }
 0x145   :  { %312 = vst.msk [vmem:[%s530_s4 + $0x8] sm:$0xf] %vm309_vm5, %v345_v31  ;;  %313 = vst.msk [vmem:[%s530_s4 + $0xc] sm:$0xf] %vm309_vm5, %v346_v32 }

// kernel: _lambda_.8
= control target key start
LH: loop header
LB: loop body
LE: loop exit
PB: predicated region body
PF: predicated region fallthrough
CT: control target
= control target key end

     0   :  { %vm410_vm0 = vcmask 523264   ;;  %vm414_vm1 = vcmask 517120   ;;  %vm487_vm5 = vcmask 519168   ;;  %vm490_vm6 = vcmask 516096   ;;  %s803_s1 = inlined_call_operand.vmem [shape: bf16[512,64], index: 1, kind: input, shape index: {}]   ;;  %s804_s0 = inlined_call_operand.vmem [shape: bf16[18,512], index: 0, kind: input, shape index: {}]   ;;  %s805_s2 = inlined_call_operand.vmem [shape: f32[1,64], index: 2, kind: input, shape index: {}]   ;;  %s806_s3 = inlined_call_operand.vmem [shape: f32[1,64], index: 3, kind: input, shape index: {}]   ;;  %s807_s4 = inlined_call_operand.vmem [shape: bf16[18,64], index: 4, kind: output, shape index: {}]  }
   0x1   :  { %v599_v0 = vld [vmem:[%s803_s1 + $0x40] sm:$0xff]   ;;  %v603_v4 = vld [vmem:[%s803_s1 + $0x48] sm:$0xff]   ;;  %v607_v8 = vld [vmem:[%s803_s1 + $0x50] sm:$0xff]  }
   0x2   :  { %v600_v1 = vld [vmem:[%s803_s1 + $0xc0] sm:$0xff]   ;;  %543 = vmatprep.subr.bf16.mxu0 %v599_v0  ;;  %v604_v5 = vld [vmem:[%s803_s1 + $0xc8] sm:$0xff]   ;;  %v608_v9 = vld [vmem:[%s803_s1 + $0xd0] sm:$0xff]  }
   0x3   :  { %v601_v2 = vld [vmem:[%s803_s1] sm:$0xff]   ;;  %571 = vmatprep.subr.bf16.mxu1 %v600_v1  ;;  %v605_v6 = vld [vmem:[%s803_s1 + $0x8] sm:$0xff]   ;;  %v609_v10 = vld [vmem:[%s803_s1 + $0x10] sm:$0xff]  }
   0x4   :  { %v602_v3 = vld [vmem:[%s803_s1 + $0x80] sm:$0xff]   ;;  %544 = vmatpush3.bf16.msra.mxu0 %v601_v2  ;;  %v606_v7 = vld [vmem:[%s803_s1 + $0x88] sm:$0xff]   ;;  %v610_v11 = vld [vmem:[%s803_s1 + $0x90] sm:$0xff]  }
   0x5   :  { %572 = vmatpush3.bf16.msra.mxu1 %v602_v3  ;;  %545 = vmatprep.subr.bf16.mxu0 %v603_v4  ;;  %v611_v12 = vld [vmem:[%s803_s1 + $0x58] sm:$0xff]   ;;  %v615_v16 = vld [vmem:[%s803_s1 + $0x60] sm:$0xff]   ;;  %v619_v20 = vld [vmem:[%s803_s1 + $0x68] sm:$0xff]  }
   0x6   :  { %573 = vmatprep.subr.bf16.mxu1 %v604_v5  ;;  %v612_v13 = vld [vmem:[%s803_s1 + $0xd8] sm:$0xff]   ;;  %v616_v17 = vld [vmem:[%s803_s1 + $0xe0] sm:$0xff]   ;;  %v620_v21 = vld [vmem:[%s803_s1 + $0xe8] sm:$0xff]  }
   0x7   :  { %v613_v14 = vld [vmem:[%s803_s1 + $0x18] sm:$0xff]   ;;  %v617_v18 = vld [vmem:[%s803_s1 + $0x20] sm:$0xff]   ;;  %v621_v22 = vld [vmem:[%s803_s1 + $0x28] sm:$0xff]  }
   0x8   :  { %546 = vmatpush3.bf16.msra.mxu0 %v605_v6  ;;  %v614_v15 = vld [vmem:[%s803_s1 + $0x98] sm:$0xff]   ;;  %v618_v19 = vld [vmem:[%s803_s1 + $0xa0] sm:$0xff]   ;;  %v622_v23 = vld [vmem:[%s803_s1 + $0xa8] sm:$0xff]  }
   0x9   :  { %574 = vmatpush3.bf16.msra.mxu1 %v606_v7  ;;  %547 = vmatprep.subr.bf16.mxu0 %v607_v8  ;;  %v623_v24 = vld [vmem:[%s803_s1 + $0x70] sm:$0xff]   ;;  %v627_v28 = vld [vmem:[%s803_s1 + $0x78] sm:$0xff]   ;;  %v22_v36 = vld [vmem:[%s804_s0 + $0x20] sm:$0x11] }
   0xa   :  { %575 = vmatprep.subr.bf16.mxu1 %v608_v9  ;;  %v624_v25 = vld [vmem:[%s803_s1 + $0xf0] sm:$0xff]   ;;  %v628_v29 = vld [vmem:[%s803_s1 + $0xf8] sm:$0xff]   ;;  %v501_v37 = vcombine.high %v22_v36, %v22_v36  ;;  %v23_v38 = vld [vmem:[%s804_s0 + $0x28] sm:$0x11]  ;;  %v500_v40 = vcombine.low %v22_v36, %v22_v36 }
   0xb   :  { %v625_v26 = vld [vmem:[%s803_s1 + $0x30] sm:$0xff]   ;;  %v629_v30 = vld [vmem:[%s803_s1 + $0x38] sm:$0xff]   ;;  %v503_v39 = vcombine.high %v23_v38, %v23_v38  ;;  %v502_v41 = vcombine.low %v23_v38, %v23_v38  ;;  %v442_v36 = vld [vmem:[%s805_s2] sm:$0x1] }
   0xc   :  { %548 = vmatpush3.bf16.msra.mxu0 %v609_v10  ;;  %v626_v27 = vld [vmem:[%s803_s1 + $0xb0] sm:$0xff]   ;;  %v630_v31 = vld [vmem:[%s803_s1 + $0xb8] sm:$0xff]  }
   0xd   :  { %576 = vmatpush3.bf16.msra.mxu1 %v610_v11  ;;  %549 = vmatprep.subr.bf16.mxu0 %v611_v12  ;;  %v631_v32 = vld [vmem:[%s804_s0] ss:$16 sps:$4 sm:$0xff]   ;;  %v633_v33 = vld [vmem:[%s804_s0 + $0x4] ss:$16 sps:$4 sm:$0xff]   ;;  %v634_v34 = vld [vmem:[%s804_s0 + $0x8] ss:$16 sps:$4 sm:$0xff]  }
   0xe   :  { %577 = vmatprep.subr.bf16.mxu1 %v612_v13  ;;  %v636_v35 = vld [vmem:[%s804_s0 + $0xc] ss:$16 sps:$4 sm:$0xff]   ;;  %346 = vmatprep.mubr.bf16.mxu0 %v633_v33 }
   0xf   :  { %394 = vmatprep.mubr.bf16.mxu1 %v636_v35 }
  0x10   :  { %550 = vmatpush3.bf16.msra.mxu0 %v613_v14 }
  0x11   :  { %578 = vmatpush3.bf16.msra.mxu1 %v614_v15  ;;  %551 = vmatprep.subr.bf16.mxu0 %v615_v16 }
  0x12   :  { %579 = vmatprep.subr.bf16.mxu1 %v616_v17 }
  0x14   :  { %552 = vmatpush3.bf16.msra.mxu0 %v617_v18 }
  0x15   :  { %580 = vmatpush3.bf16.msra.mxu1 %v618_v19  ;;  %553 = vmatprep.subr.bf16.mxu0 %v619_v20 }
  0x16   :  { %581 = vmatprep.subr.bf16.mxu1 %v620_v21 }
  0x18   :  { %554 = vmatpush3.bf16.msra.mxu0 %v621_v22 }
  0x19   :  { %582 = vmatpush3.bf16.msra.mxu1 %v622_v23  ;;  %555 = vmatprep.subr.bf16.mxu0 %v623_v24 }
  0x1a   :  { %583 = vmatprep.subr.bf16.mxu1 %v624_v25 }
  0x1c   :  { %556 = vmatpush3.bf16.msra.mxu0 %v625_v26 }
  0x1d   :  { %584 = vmatpush3.bf16.msra.mxu1 %v626_v27  ;;  %557 = vmatprep.subr.bf16.mxu0 %v627_v28 }
  0x1e   :  { %585 = vmatprep.subr.bf16.mxu1 %v628_v29 }
  0x20   :  { %558 = vmatpush3.bf16.msra.mxu0 %v629_v30 }
  0x21   :  { %586 = vmatpush3.bf16.msra.mxu1 %v630_v31 }
  0x23   :  { %347 = vmatmul.mubr.bf16.vlgmr.msra.gmra.mrb[0].mxu0 %v631_v32 }
  0x24   :  { %395 = vmatmul.mubr.bf16.vlgmr.msra.gmra.mrb[0].mxu1 %v634_v34  ;;  %354 = vmatprep.mubr.bf16.mxu0 %v501_v37  ;;  %v447_v34 = vlaneseq }
  0x25   :  { %402 = vmatprep.mubr.bf16.mxu1 %v503_v39 }
  0x26   :  { %v448_v35 = vshrl.u32 %v447_v34, 7 }
  0x28   :  { %v449_v37 = vsub.s32 0, %v448_v35 }
  0x2b   :  { %355 = vmatmul.mubr.bf16.gmra.mrb[4].mxu0 %v500_v40 }
  0x2c   :  { %403 = vmatmul.mubr.bf16.gmra.mrb[4].mxu1 %v502_v41  ;;  %v536_v41 = vld [vmem:[%s806_s3] ss:$0 sm:$0xff] }
  0xf6   :  { %v559_v42 = vpop.f32.mrb[0].mxu0 }
  0xf7   :  { %v587_v43 = vpop.f32.mrb[0].mxu1  ;;  %v560_v44 = vpop.f32.mrb[1].mxu0 }
  0xf8   :  { %v561_v45 = vadd.f32 %v560_v44, %v559_v42  ;;  %v588_v46 = vpop.f32.mrb[1].mxu1  ;;  %v562_v47 = vpop.f32.mrb[2].mxu0 }
  0xf9   :  { %v589_v48 = vadd.f32 %v588_v46, %v587_v43  ;;  %v590_v49 = vpop.f32.mrb[2].mxu1  ;;  %v563_v50 = vpop.f32.mrb[3].mxu0 }
  0xfa   :  { %v564_v51 = vadd.f32 %v563_v50, %v562_v47  ;;  %v591_v52 = vpop.f32.mrb[3].mxu1 }
  0xfb   :  { %v397_v53 = vadd.f32 %v589_v48, %v561_v45  ;;  %v592_v54 = vadd.f32 %v591_v52, %v590_v49 }
  0xfd   :  { %v400_v55 = vadd.f32 %v592_v54, %v564_v51  ;;  %v411_v57 = vsel %vm410_vm0, %v397_v53, 0.0 }
  0xfe   :  { %v565_v56 = vpop.f32.mrb[4].mxu0 }
  0xff   :  { %v412_v58 = vsel %vm410_vm0, %v400_v55, 0.0  ;;  %v593_v59 = vpop.f32.mrb[4].mxu1  ;;  %v566_v60 = vpop.f32.mrb[5].mxu0 }
 0x100   :  { %v413_v61 = vadd.f32 %v412_v58, %v411_v57  ;;  %v567_v62 = vadd.f32 %v566_v60, %v565_v56  ;;  %v594_v63 = vpop.f32.mrb[5].mxu1  ;;  %v568_v0 = vpop.f32.mrb[6].mxu0 }
 0x101   :  { %v595_v1 = vadd.f32 %v594_v63, %v593_v59  ;;  %v596_v2 = vpop.f32.mrb[6].mxu1  ;;  %v569_v3 = vpop.f32.mrb[7].mxu0 }
 0x102   :  { %v597_v4 = vpop.f32.mrb[7].mxu1 }
 0x103   :  { %v405_v5 = vadd.f32 %v595_v1, %v567_v62 }
 0x105   :  { %v415_v6 = vsel %vm414_vm1, %v405_v5, 0.0 }
 0x106   :  { %v416_v7 = vadd.f32 %v415_v6, %v413_v61 }
 0x108   :  { %v417_v8 = vrot.slane %v416_v7, 4 }
 0x10a   :  { %v418_v9 = vadd.f32 %v417_v8, %v416_v7 }
 0x10c   :  { %v419_v10 = vrot.slane %v418_v9, 2 }
 0x10e   :  { %v420_v11 = vadd.f32 %v419_v10, %v418_v9 }
 0x110   :  { %v421_v12 = vrot.slane %v420_v11, 1 }
 0x112   :  { %v422_v13 = vadd.f32 %v421_v12, %v420_v11 }
 0x114   :  { %v423_v14 = vmul.f32 0.055555556, %v422_v13 }
 0x116   :  { %v424_v15 = vsub.f32 %v397_v53, %v423_v14  ;;  %v425_v16 = vsub.f32 %v400_v55, %v423_v14  ;;  %v426_v17 = vsub.f32 %v405_v5, %v423_v14 }
 0x118   :  { %v427_v18 = vmul.f32 %v424_v15, %v424_v15  ;;  %v428_v19 = vmul.f32 %v425_v16, %v425_v16  ;;  %v429_v20 = vmul.f32 %v426_v17, %v426_v17 }
 0x11a   :  { %v430_v21 = vsel %vm410_vm0, %v427_v18, 0.0  ;;  %v431_v22 = vsel %vm410_vm0, %v428_v19, 0.0  ;;  %v433_v24 = vsel %vm414_vm1, %v429_v20, 0.0 }
 0x11b   :  { %v432_v23 = vadd.f32 %v431_v22, %v430_v21 }
 0x11d   :  { %v434_v25 = vadd.f32 %v433_v24, %v432_v23 }
 0x11f   :  { %v435_v26 = vrot.slane %v434_v25, 4 }
 0x121   :  { %v436_v27 = vadd.f32 %v435_v26, %v434_v25 }
 0x123   :  { %v437_v28 = vrot.slane %v436_v27, 2 }
 0x125   :  { %v438_v29 = vadd.f32 %v437_v28, %v436_v27 }
 0x127   :  { %v439_v30 = vrot.slane %v438_v29, 1 }
 0x129   :  { %v440_v31 = vadd.f32 %v439_v30, %v438_v29 }
 0x12b   :  { %v441_v32 = vmul.f32 0.055555556, %v440_v31 }
 0x12d   :  { %v443_v33 = vadd.f32 1e-05, %v441_v32 }
 0x12f   :  { %641 = vrsqrt.f32 %v443_v33 }
 0x139   :  { %v642_v38 = vpop.eup %641 }
 0x13a   :  { %v445_v39 = vmul.f32 %v642_v38, %v442_v36 }
 0x13c   :  { %v450_v40 = vrot.slane %v445_v39, %v449_v37 }
 0x13e   :  { %v452_v42 = vmul.f32 %v450_v40, %v424_v15  ;;  %v453_v43 = vmul.f32 %v450_v40, %v425_v16  ;;  %v454_v44 = vmul.f32 %v450_v40, %v426_v17 }
 0x140   :  { %v462_v45 = vadd.f32 %v536_v41, %v452_v42  ;;  %v463_v46 = vadd.f32 %v536_v41, %v453_v43  ;;  %v464_v47 = vadd.f32 %v536_v41, %v454_v44 }
 0x142   :  { %vm465_vm2 = vcmp.gt.f32.partialorder %v462_v45, 0.0  ;;  %vm466_vm3 = vcmp.gt.f32.partialorder %v463_v46, 0.0  ;;  %vm467_vm4 = vcmp.gt.f32.partialorder %v464_v47, 0.0  ;;  %v468_v48 = vmul.f32 0.2, %v462_v45 }
 0x143   :  { %v469_v49 = vmul.f32 0.2, %v463_v46  ;;  %v470_v50 = vmul.f32 0.2, %v464_v47 }
 0x144   :  { %v471_v51 = vsel %vm465_vm2, %v462_v45, %v468_v48 }
 0x145   :  { %v472_v52 = vsel %vm466_vm3, %v463_v46, %v469_v49  ;;  %v473_v53 = vsel %vm467_vm4, %v464_v47, %v470_v50  ;;  %v540_v54 = vpack.c.bf16 %v471_v51, %v471_v51 }
 0x146   :  { %v541_v55 = vpack.c.bf16 %v472_v52, %v472_v52  ;;  %v542_v56 = vpack.c.bf16 %v473_v53, %v473_v53 }
 0x147   :  { %488 = vst.msk [vmem:[%s807_s4] sm:$0xf] %vm487_vm5, %v540_v54 }
 0x148   :  { %489 = vst.msk [vmem:[%s807_s4 + $0x4] sm:$0xf] %vm487_vm5, %v541_v55 }
 0x149   :  { %491 = vst.msk [vmem:[%s807_s4 + $0x8] sm:$0x1] %vm490_vm6, %v542_v56 }

// kernel: _lambda_.9
= control target key start
LH: loop header
LB: loop body
LE: loop exit
PB: predicated region body
PF: predicated region fallthrough
CT: control target
= control target key end

     0   :  { %vm729_vm0 = vcmask 3072   ;;  %s1198_s1 = inlined_call_operand.vmem [shape: bf16[1024,1], index: 1, kind: input, shape index: {}]   ;;  %s1199_s0 = inlined_call_operand.vmem [shape: bf16[8,1024], index: 0, kind: input, shape index: {}]   ;;  %s1200_s2 = inlined_call_operand.<no memory space> [shape: f32[1,1], index: 2, kind: input, shape index: {}]   ;;  %s1201_s3 = inlined_call_operand.vmem [shape: bf16[8,1], index: 3, kind: output, shape index: {}]  }
   0x1   :  { %v896_v0 = vld [vmem:[%s1198_s1 + $0x40] sm:$0xff]   ;;  %v900_v4 = vld [vmem:[%s1198_s1 + $0x48] sm:$0xff]   ;;  %v904_v8 = vld [vmem:[%s1198_s1 + $0x50] sm:$0xff]  }
   0x2   :  { %v897_v1 = vld [vmem:[%s1198_s1 + $0xc0] sm:$0xff]   ;;  %808 = vmatprep.subr.bf16.mxu0 %v896_v0  ;;  %v901_v5 = vld [vmem:[%s1198_s1 + $0xc8] sm:$0xff]   ;;  %v905_v9 = vld [vmem:[%s1198_s1 + $0xd0] sm:$0xff]  }
   0x3   :  { %v898_v2 = vld [vmem:[%s1198_s1] sm:$0xff]   ;;  %830 = vmatprep.subr.bf16.mxu1 %v897_v1  ;;  %v902_v6 = vld [vmem:[%s1198_s1 + $0x8] sm:$0xff]   ;;  %v906_v10 = vld [vmem:[%s1198_s1 + $0x10] sm:$0xff]  }
   0x4   :  { %v899_v3 = vld [vmem:[%s1198_s1 + $0x80] sm:$0xff]   ;;  %809 = vmatpush3.bf16.msra.mxu0 %v898_v2  ;;  %v903_v7 = vld [vmem:[%s1198_s1 + $0x88] sm:$0xff]   ;;  %v907_v11 = vld [vmem:[%s1198_s1 + $0x90] sm:$0xff]  }
   0x5   :  { %831 = vmatpush3.bf16.msra.mxu1 %v899_v3  ;;  %810 = vmatprep.subr.bf16.mxu0 %v900_v4  ;;  %v908_v12 = vld [vmem:[%s1198_s1 + $0x58] sm:$0xff]   ;;  %v912_v16 = vld [vmem:[%s1198_s1 + $0x60] sm:$0xff]   ;;  %v916_v20 = vld [vmem:[%s1198_s1 + $0x68] sm:$0xff]  }
   0x6   :  { %832 = vmatprep.subr.bf16.mxu1 %v901_v5  ;;  %v909_v13 = vld [vmem:[%s1198_s1 + $0xd8] sm:$0xff]   ;;  %v913_v17 = vld [vmem:[%s1198_s1 + $0xe0] sm:$0xff]   ;;  %v917_v21 = vld [vmem:[%s1198_s1 + $0xe8] sm:$0xff]  }
   0x7   :  { %v910_v14 = vld [vmem:[%s1198_s1 + $0x18] sm:$0xff]   ;;  %v914_v18 = vld [vmem:[%s1198_s1 + $0x20] sm:$0xff]   ;;  %v918_v22 = vld [vmem:[%s1198_s1 + $0x28] sm:$0xff]  }
   0x8   :  { %811 = vmatpush3.bf16.msra.mxu0 %v902_v6  ;;  %v911_v15 = vld [vmem:[%s1198_s1 + $0x98] sm:$0xff]   ;;  %v915_v19 = vld [vmem:[%s1198_s1 + $0xa0] sm:$0xff]   ;;  %v919_v23 = vld [vmem:[%s1198_s1 + $0xa8] sm:$0xff]  }
   0x9   :  { %833 = vmatpush3.bf16.msra.mxu1 %v903_v7  ;;  %812 = vmatprep.subr.bf16.mxu0 %v904_v8  ;;  %v920_v24 = vld [vmem:[%s1198_s1 + $0x70] sm:$0xff]   ;;  %v924_v28 = vld [vmem:[%s1198_s1 + $0x78] sm:$0xff]   ;;  %v17_v32 = vld [vmem:[%s1199_s0] sm:$0xff] }
   0xa   :  { %834 = vmatprep.subr.bf16.mxu1 %v905_v9  ;;  %v921_v25 = vld [vmem:[%s1198_s1 + $0xf0] sm:$0xff]   ;;  %v925_v29 = vld [vmem:[%s1198_s1 + $0xf8] sm:$0xff]   ;;  %v18_v33 = vld [vmem:[%s1199_s0 + $0x8] sm:$0xff]  ;;  %v736_v34 = vcombine.low %v17_v32, %v17_v32  ;;  %v737_v35 = vcombine.high %v17_v32, %v17_v32 }
   0xb   :  { %v922_v26 = vld [vmem:[%s1198_s1 + $0x30] sm:$0xff]   ;;  %v926_v30 = vld [vmem:[%s1198_s1 + $0x38] sm:$0xff]   ;;  %v738_v36 = vcombine.low %v18_v33, %v18_v33  ;;  %v739_v37 = vcombine.high %v18_v33, %v18_v33  ;;  %v932_v38 = vld [vmem:[%s1198_s1 + $0x140] sm:$0xff]  }
   0xc   :  { %813 = vmatpush3.bf16.msra.mxu0 %v906_v10  ;;  %v923_v27 = vld [vmem:[%s1198_s1 + $0xb0] sm:$0xff]   ;;  %v927_v31 = vld [vmem:[%s1198_s1 + $0xb8] sm:$0xff]   ;;  %v933_v39 = vld [vmem:[%s1198_s1 + $0x1c0] sm:$0xff]   ;;  %600 = vmatprep.mubr.bf16.mxu0 %v737_v35 }
   0xd   :  { %835 = vmatpush3.bf16.msra.mxu1 %v907_v11  ;;  %814 = vmatprep.subr.bf16.mxu0 %v908_v12  ;;  %v934_v40 = vld [vmem:[%s1198_s1 + $0x100] sm:$0xff]   ;;  %v936_v42 = vld [vmem:[%s1198_s1 + $0x148] sm:$0xff]   ;;  %v940_v46 = vld [vmem:[%s1198_s1 + $0x150] sm:$0xff]   ;;  %v8_v12 = vstv %s1200_s2 }
   0xe   :  { %836 = vmatprep.subr.bf16.mxu1 %v909_v13  ;;  %640 = vmatprep.mubr.bf16.mxu1 %v739_v37  ;;  %v935_v41 = vld [vmem:[%s1198_s1 + $0x180] sm:$0xff]   ;;  %v937_v43 = vld [vmem:[%s1198_s1 + $0x1c8] sm:$0xff]   ;;  %v941_v47 = vld [vmem:[%s1198_s1 + $0x1d0] sm:$0xff]   ;;  %9 = vst [vmem:[#allocation2] sm:$0x1] %v8_v12 }
   0xf   :  { %v938_v44 = vld [vmem:[%s1198_s1 + $0x108] sm:$0xff]   ;;  %v942_v48 = vld [vmem:[%s1198_s1 + $0x110] sm:$0xff]   ;;  %v944_v50 = vld [vmem:[%s1198_s1 + $0x158] sm:$0xff]  }
  0x10   :  { %815 = vmatpush3.bf16.msra.mxu0 %v910_v14  ;;  %v939_v45 = vld [vmem:[%s1198_s1 + $0x188] sm:$0xff]   ;;  %v943_v49 = vld [vmem:[%s1198_s1 + $0x190] sm:$0xff]   ;;  %v945_v51 = vld [vmem:[%s1198_s1 + $0x1d8] sm:$0xff]  }
  0x11   :  { %837 = vmatpush3.bf16.msra.mxu1 %v911_v15  ;;  %816 = vmatprep.subr.bf16.mxu0 %v912_v16  ;;  %v946_v52 = vld [vmem:[%s1198_s1 + $0x118] sm:$0xff]   ;;  %v948_v54 = vld [vmem:[%s1198_s1 + $0x160] sm:$0xff]   ;;  %v952_v58 = vld [vmem:[%s1198_s1 + $0x168] sm:$0xff]  }
  0x12   :  { %838 = vmatprep.subr.bf16.mxu1 %v913_v17  ;;  %v947_v53 = vld [vmem:[%s1198_s1 + $0x198] sm:$0xff]   ;;  %v949_v55 = vld [vmem:[%s1198_s1 + $0x1e0] sm:$0xff]   ;;  %v953_v59 = vld [vmem:[%s1198_s1 + $0x1e8] sm:$0xff]  }
  0x13   :  { %v950_v56 = vld [vmem:[%s1198_s1 + $0x120] sm:$0xff]   ;;  %v954_v60 = vld [vmem:[%s1198_s1 + $0x128] sm:$0xff]   ;;  %v956_v62 = vld [vmem:[%s1198_s1 + $0x170] sm:$0xff]  }
  0x14   :  { %817 = vmatpush3.bf16.msra.mxu0 %v914_v18  ;;  %v951_v57 = vld [vmem:[%s1198_s1 + $0x1a0] sm:$0xff]   ;;  %v955_v61 = vld [vmem:[%s1198_s1 + $0x1a8] sm:$0xff]   ;;  %v957_v63 = vld [vmem:[%s1198_s1 + $0x1f0] sm:$0xff]  }
  0x15   :  { %839 = vmatpush3.bf16.msra.mxu1 %v915_v19  ;;  %818 = vmatprep.subr.bf16.mxu0 %v916_v20  ;;  %v958_v0 = vld [vmem:[%s1198_s1 + $0x130] sm:$0xff]   ;;  %v960_v2 = vld [vmem:[%s1198_s1 + $0x178] sm:$0xff]   ;;  %v735_v15 = vld [vmem:[#allocation2] ss:$0 sm:$0xff] }
  0x16   :  { %840 = vmatprep.subr.bf16.mxu1 %v917_v21  ;;  %v959_v1 = vld [vmem:[%s1198_s1 + $0x1b0] sm:$0xff]   ;;  %v961_v3 = vld [vmem:[%s1198_s1 + $0x1f8] sm:$0xff]  }
  0x17   :  { %v962_v4 = vld [vmem:[%s1198_s1 + $0x138] sm:$0xff]   ;;  %v19_v6 = vld [vmem:[%s1199_s0 + $0x10] sm:$0xff] }
  0x18   :  { %819 = vmatpush3.bf16.msra.mxu0 %v918_v22  ;;  %v963_v5 = vld [vmem:[%s1198_s1 + $0x1b8] sm:$0xff]   ;;  %v740_v7 = vcombine.low %v19_v6, %v19_v6  ;;  %v741_v8 = vcombine.high %v19_v6, %v19_v6 }
  0x19   :  { %841 = vmatpush3.bf16.msra.mxu1 %v919_v23  ;;  %820 = vmatprep.subr.bf16.mxu0 %v920_v24  ;;  %v20_v9 = vld [vmem:[%s1199_s0 + $0x18] sm:$0xff] }
  0x1a   :  { %842 = vmatprep.subr.bf16.mxu1 %v921_v25  ;;  %v742_v10 = vcombine.low %v20_v9, %v20_v9  ;;  %v743_v11 = vcombine.high %v20_v9, %v20_v9 }
  0x1c   :  { %821 = vmatpush3.bf16.msra.mxu0 %v922_v26 }
  0x1d   :  { %843 = vmatpush3.bf16.msra.mxu1 %v923_v27  ;;  %822 = vmatprep.subr.bf16.mxu0 %v924_v28 }
  0x1e   :  { %844 = vmatprep.subr.bf16.mxu1 %v925_v29 }
  0x20   :  { %823 = vmatpush3.bf16.msra.mxu0 %v926_v30 }
  0x21   :  { %845 = vmatpush3.bf16.msra.mxu1 %v927_v31  ;;  %852 = vmatprep.subr.bf16.mxu0 %v932_v38 }
  0x22   :  { %874 = vmatprep.subr.bf16.mxu1 %v933_v39 }
  0x23   :  { %601 = vmatmul.mubr.bf16.vlgmr.msra.gmra.mrb[0].mxu0 %v736_v34 }
  0x24   :  { %641 = vmatmul.mubr.bf16.vlgmr.msra.gmra.mrb[0].mxu1 %v738_v36  ;;  %853 = vmatpush3.bf16.msra.mxu0 %v934_v40 }
  0x25   :  { %875 = vmatpush3.bf16.msra.mxu1 %v935_v41  ;;  %854 = vmatprep.subr.bf16.mxu0 %v936_v42 }
  0x26   :  { %876 = vmatprep.subr.bf16.mxu1 %v937_v43  ;;  %680 = vmatprep.mubr.bf16.mxu0 %v741_v8 }
  0x27   :  { %720 = vmatprep.mubr.bf16.mxu1 %v743_v11 }
  0x28   :  { %855 = vmatpush3.bf16.msra.mxu0 %v938_v44 }
  0x29   :  { %877 = vmatpush3.bf16.msra.mxu1 %v939_v45  ;;  %856 = vmatprep.subr.bf16.mxu0 %v940_v46 }
  0x2a   :  { %878 = vmatprep.subr.bf16.mxu1 %v941_v47 }
  0x2c   :  { %857 = vmatpush3.bf16.msra.mxu0 %v942_v48 }
  0x2d   :  { %879 = vmatpush3.bf16.msra.mxu1 %v943_v49  ;;  %858 = vmatprep.subr.bf16.mxu0 %v944_v50 }
  0x2e   :  { %880 = vmatprep.subr.bf16.mxu1 %v945_v51 }
  0x30   :  { %859 = vmatpush3.bf16.msra.mxu0 %v946_v52 }
  0x31   :  { %881 = vmatpush3.bf16.msra.mxu1 %v947_v53  ;;  %860 = vmatprep.subr.bf16.mxu0 %v948_v54 }
  0x32   :  { %882 = vmatprep.subr.bf16.mxu1 %v949_v55 }
  0x34   :  { %861 = vmatpush3.bf16.msra.mxu0 %v950_v56 }
  0x35   :  { %883 = vmatpush3.bf16.msra.mxu1 %v951_v57  ;;  %862 = vmatprep.subr.bf16.mxu0 %v952_v58 }
  0x36   :  { %884 = vmatprep.subr.bf16.mxu1 %v953_v59 }
  0x38   :  { %863 = vmatpush3.bf16.msra.mxu0 %v954_v60 }
  0x39   :  { %885 = vmatpush3.bf16.msra.mxu1 %v955_v61  ;;  %864 = vmatprep.subr.bf16.mxu0 %v956_v62 }
  0x3a   :  { %886 = vmatprep.subr.bf16.mxu1 %v957_v63 }
  0x3c   :  { %865 = vmatpush3.bf16.msra.mxu0 %v958_v0 }
  0x3d   :  { %887 = vmatpush3.bf16.msra.mxu1 %v959_v1  ;;  %866 = vmatprep.subr.bf16.mxu0 %v960_v2 }
  0x3e   :  { %888 = vmatprep.subr.bf16.mxu1 %v961_v3 }
  0x40   :  { %867 = vmatpush3.bf16.msra.mxu0 %v962_v4 }
  0x41   :  { %889 = vmatpush3.bf16.msra.mxu1 %v963_v5 }
  0x43   :  { %681 = vmatmul.mubr.bf16.vlgmr.msra.gmra.mrb[4].mxu0 %v740_v7 }
  0x44   :  { %721 = vmatmul.mubr.bf16.vlgmr.msra.gmra.mrb[4].mxu1 %v742_v10 }
  0xf6   :  { %v824_v13 = vpop.f32.mrb[0].mxu0 }
  0xf7   :  { %v846_v14 = vpop.f32.mrb[0].mxu1  ;;  %v825_v16 = vpop.f32.mrb[1].mxu0 }
  0xf8   :  { %v847_v17 = vpop.f32.mrb[1].mxu1  ;;  %v826_v18 = vadd.f32 %v825_v16, %v824_v13  ;;  %v827_v20 = vpop.f32.mrb[2].mxu0 }
  0xf9   :  { %v848_v19 = vadd.f32 %v847_v17, %v846_v14  ;;  %v849_v21 = vpop.f32.mrb[2].mxu1  ;;  %v828_v22 = vpop.f32.mrb[3].mxu0 }
  0xfa   :  { %v850_v23 = vpop.f32.mrb[3].mxu1  ;;  %v603_v24 = vadd.f32 %v826_v18, %v735_v15 }
  0xfc   :  { %v643_v25 = vadd.f32 %v848_v19, %v603_v24 }
 0x116   :  { %v868_v26 = vpop.f32.mrb[4].mxu0 }
 0x117   :  { %v890_v27 = vpop.f32.mrb[4].mxu1  ;;  %v869_v28 = vpop.f32.mrb[5].mxu0 }
 0x118   :  { %v891_v29 = vpop.f32.mrb[5].mxu1  ;;  %v870_v30 = vadd.f32 %v869_v28, %v868_v26  ;;  %v871_v32 = vpop.f32.mrb[6].mxu0 }
 0x119   :  { %v892_v31 = vadd.f32 %v891_v29, %v890_v27  ;;  %v893_v33 = vpop.f32.mrb[6].mxu1  ;;  %v872_v34 = vpop.f32.mrb[7].mxu0 }
 0x11a   :  { %v894_v35 = vpop.f32.mrb[7].mxu1  ;;  %v683_v36 = vadd.f32 %v870_v30, %v643_v25 }
 0x11c   :  { %v723_v37 = vadd.f32 %v892_v31, %v683_v36 }
 0x11e   :  { %v728_v38 = vpack.c.bf16 %v723_v37, %v723_v37 }
 0x120   :  { %730 = vst.msk [vmem:[%s1201_s3] sm:$0xf] %vm729_vm0, %v728_v38 }

</bundles_post_ra>
